<compile_context>
chip_gen: v7x
topology: tpu7x:2x2x1
jax: 0.10.0
libtpu: 0.0.40
codegen_flags: <defaults>
</compile_context>

<pallas_src>
import math

import jax
import jax.numpy as jnp
from jax.experimental import pallas as pl
from jax.experimental.pallas import tpu as pltpu

# ---------------- small synthetic "bert-base" config ----------------
VOCAB = 1000
TYPE_VOCAB = 2
MAX_POS = 64
HIDDEN = 128          # hidden_size
NUM_HEADS = 2
HEAD_DIM = HIDDEN // NUM_HEADS
INTERMEDIATE = 256    # intermediate_size
NUM_LAYERS = 2
NUM_LABELS = 3
LN_EPS = 1e-12

BATCH = 2
SEQ = 8


# ---------------- in-kernel math helpers (pure jnp, traced inside kernel) -----
def _layer_norm(x, g, b):
    mu = jnp.mean(x, axis=-1, keepdims=True)
    var = jnp.mean(jnp.square(x - mu), axis=-1, keepdims=True)
    return (x - mu) * jax.lax.rsqrt(var + LN_EPS) * g + b


def _gelu(x):
    # TODO(synk): original BERT uses the erf-based gelu; tanh approximation used here.
    return 0.5 * x * (1.0 + jnp.tanh(0.7978845608028654 * (x + 0.044715 * x * x * x)))


def _softmax_last(x, approx):
    m = jnp.max(x, axis=-1, keepdims=True)
    e = jnp.exp(x - m)
    s = jnp.sum(e, axis=-1, keepdims=True)
    if approx:
        return e * pl.reciprocal(s, approx=True)    # EUP slot, ~free
    return e / s


# ---------------- fused BERT kernel: grid = (batch, layers) ----------------
def bert_stack_kernel(emb_ref, mask_ref, lng_ref, lnb_ref,
                      wqkv_ref, bqkv_ref,
                      wo_ref, bo_ref, g1_ref, b1_ref,
                      wi_ref, bi_ref, wf_ref, bf_ref, g2_ref, b2_ref,
                      wp_ref, bp_ref, wc_ref, bc_ref,
                      probs_ref, acc_ref):
    layer = pl.program_id(1)

    # Layer 0: embedding LayerNorm seeds the carried activation for this batch.
    @pl.when(layer == 0)
    def _():
        acc_ref[...] = _layer_norm(emb_ref[...], lng_ref[...], lnb_ref[...])

    x = acc_ref[...]                                   # (SEQ, HIDDEN) f32 carry
    x_bf = x.astype(jnp.bfloat16)

    # --- self-attention: ONE fused QKV matmul, then 128-lane-aligned splits ---
    qkv = (jnp.dot(x_bf, wqkv_ref[...], preferred_element_type=jnp.float32)
           + bqkv_ref[...])                            # (SEQ, 3*HIDDEN)
    q = qkv[:, 0 * HIDDEN:1 * HIDDEN]
    k = qkv[:, 1 * HIDDEN:2 * HIDDEN]
    v = qkv[:, 2 * HIDDEN:3 * HIDDEN]

    def split_heads(t):                                # (S, H) -> (NH, S, HD) bf16
        return jnp.stack(
            [t[:, h * HEAD_DIM:(h + 1) * HEAD_DIM] for h in range(NUM_HEADS)],
            axis=0).astype(jnp.bfloat16)

    qh, kh, vh = split_heads(q), split_heads(k), split_heads(v)

    scale = 1.0 / math.sqrt(HEAD_DIM)
    bias = mask_ref[...][None, :, :]                   # (1, 1, S) additive mask

    # single head-batched einsum pair (no per-head matmul loop, no lane concat
    # of per-head score/context pieces)
    scores = jnp.einsum('nqd,nkd->nqk', qh, kh,
                        preferred_element_type=jnp.float32) * scale + bias
    p_attn = _softmax_last(scores, approx=True)        # (NH, S, S)
    ctx = jnp.einsum('nqk,nkd->nqd', p_attn.astype(jnp.bfloat16), vh,
                     preferred_element_type=jnp.float32)            # (NH, S, HD)
    ctx = jnp.concatenate([ctx[h] for h in range(NUM_HEADS)], axis=-1)  # (S, H)

    attn_out = (jnp.dot(ctx.astype(jnp.bfloat16), wo_ref[...],
                        preferred_element_type=jnp.float32) + bo_ref[...])
    h1 = _layer_norm(x + attn_out, g1_ref[...], b1_ref[...])

    # --- feed-forward ---------------------------------------------------------
    inter = _gelu(jnp.dot(h1.astype(jnp.bfloat16), wi_ref[...],
                          preferred_element_type=jnp.float32) + bi_ref[...])
    ffn = jnp.dot(inter.astype(jnp.bfloat16), wf_ref[...],
                  preferred_element_type=jnp.float32) + bf_ref[...]
    h2 = _layer_norm(h1 + ffn, g2_ref[...], b2_ref[...])

    acc_ref[...] = h2                                  # carry to next layer

    # Last layer: pooler (CLS -> dense -> tanh), dropout(eval)=identity,
    # classifier linear, softmax over labels.
    @pl.when(layer == pl.num_programs(1) - 1)
    def _():
        cls = h2[0:1, :]                                           # (1, H) CLS row
        pooled = jnp.tanh(
            jnp.dot(cls, wp_ref[...], preferred_element_type=jnp.float32)
            + bp_ref[...])
        logits = (jnp.dot(pooled, wc_ref[...], preferred_element_type=jnp.float32)
                  + bc_ref[...])
        probs = _softmax_last(logits, approx=False)                # (1, NUM_LABELS)
        probs_ref[...] = probs[None].astype(probs_ref.dtype)       # (1, 1, NUM_LABELS)


# ---------------- pallas_call wrapper ----------------
def bert_pallas_call(emb2d, mask_bias, p):
    def const_spec(shape):                       # broadcast constants
        return pl.BlockSpec(shape, lambda b, l: (0,) * len(shape))

    def layer_spec(shape):                       # stacked (L, ...) weight slabs
        return pl.BlockSpec((pl.Squeezed(),) + shape, lambda b, l: (l, 0, 0))

    in_specs = [
        pl.BlockSpec((SEQ, HIDDEN), lambda b, l: (b, 0)),             # embeddings
        pl.BlockSpec((pl.Squeezed(), 1, SEQ), lambda b, l: (b, 0, 0)),  # mask bias
        const_spec((1, HIDDEN)),                        # emb LN gamma
        const_spec((1, HIDDEN)),                        # emb LN beta
        layer_spec((HIDDEN, 3 * HIDDEN)),               # fused w_qkv
        layer_spec((1, 3 * HIDDEN)),                    # fused b_qkv
        layer_spec((HIDDEN, HIDDEN)),                   # w_attn_out
        layer_spec((1, HIDDEN)),                        # b_attn_out
        layer_spec((1, HIDDEN)),                        # ln1 gamma
        layer_spec((1, HIDDEN)),                        # ln1 beta
        layer_spec((HIDDEN, INTERMEDIATE)),             # w_inter
        layer_spec((1, INTERMEDIATE)),                  # b_inter
        layer_spec((INTERMEDIATE, HIDDEN)),             # w_ffn_out
        layer_spec((1, HIDDEN)),                        # b_ffn_out
        layer_spec((1, HIDDEN)),                        # ln2 gamma
        layer_spec((1, HIDDEN)),                        # ln2 beta
        const_spec((HIDDEN, HIDDEN)),                   # pooler_w
        const_spec((1, HIDDEN)),                        # pooler_b
        const_spec((HIDDEN, NUM_LABELS)),               # cls_w
        const_spec((1, NUM_LABELS)),                    # cls_b
    ]

    out = pl.pallas_call(
        bert_stack_kernel,
        out_shape=jax.ShapeDtypeStruct((BATCH, 1, NUM_LABELS), jnp.float32),
        grid=(BATCH, NUM_LAYERS),
        in_specs=in_specs,
        out_specs=pl.BlockSpec((1, 1, NUM_LABELS), lambda b, l: (b, 0, 0)),
        scratch_shapes=[pltpu.VMEM((SEQ, HIDDEN), jnp.float32)],   # activation carry
        compiler_params=pltpu.CompilerParams(
            dimension_semantics=("parallel", "arbitrary"),   # batch || across TCs (v7x)
            vmem_limit_bytes=32 * 1024 * 1024),
    )(emb2d, mask_bias,
      p["emb_ln_g"], p["emb_ln_b"],
      p["w_qkv"], p["b_qkv"],
      p["w_attn_out"], p["b_attn_out"], p["ln1_g"], p["ln1_b"],
      p["w_inter"], p["b_inter"], p["w_ffn_out"], p["b_ffn_out"],
      p["ln2_g"], p["ln2_b"],
      p["pooler_w"], p["pooler_b"], p["cls_w"], p["cls_b"])
    return out.reshape(BATCH, NUM_LABELS)


# ---------------- deterministic parameter init ----------------
def init_params(key):
    keys = iter(jax.random.split(key, 16))

    def normal(k, shape, scale=0.02, dtype=jnp.float32):
        return (scale * jax.random.normal(k, shape, dtype=jnp.float32)).astype(dtype)

    L = NUM_LAYERS
    params = {
        "word_emb": normal(next(keys), (VOCAB, HIDDEN)),
        "pos_emb": normal(next(keys), (MAX_POS, HIDDEN)),
        "type_emb": normal(next(keys), (TYPE_VOCAB, HIDDEN)),
        "emb_ln_g": jnp.ones((1, HIDDEN), jnp.float32),
        "emb_ln_b": jnp.zeros((1, HIDDEN), jnp.float32),
        # stacked per-layer encoder weights: matrices in bf16 (MXU / DMA),
        # biases and LayerNorm params in f32.  For a real checkpoint, W_q|W_k|W_v
        # (and their biases) are concatenated offline into the fused slabs.
        "w_qkv": normal(next(keys), (L, HIDDEN, 3 * HIDDEN), dtype=jnp.bfloat16),
        "b_qkv": jnp.zeros((L, 1, 3 * HIDDEN), jnp.float32),
        "w_attn_out": normal(next(keys), (L, HIDDEN, HIDDEN), dtype=jnp.bfloat16),
        "b_attn_out": jnp.zeros((L, 1, HIDDEN), jnp.float32),
        "ln1_g": jnp.ones((L, 1, HIDDEN), jnp.float32),
        "ln1_b": jnp.zeros((L, 1, HIDDEN), jnp.float32),
        "w_inter": normal(next(keys), (L, HIDDEN, INTERMEDIATE), dtype=jnp.bfloat16),
        "b_inter": jnp.zeros((L, 1, INTERMEDIATE), jnp.float32),
        "w_ffn_out": normal(next(keys), (L, INTERMEDIATE, HIDDEN), dtype=jnp.bfloat16),
        "b_ffn_out": jnp.zeros((L, 1, HIDDEN), jnp.float32),
        "ln2_g": jnp.ones((L, 1, HIDDEN), jnp.float32),
        "ln2_b": jnp.zeros((L, 1, HIDDEN), jnp.float32),
        # head (tiny; keep f32)
        "pooler_w": normal(next(keys), (HIDDEN, HIDDEN)),
        "pooler_b": jnp.zeros((1, HIDDEN), jnp.float32),
        # classifier uses xavier_normal_ init in the PyTorch module
        "cls_w": (jax.random.normal(next(keys), (HIDDEN, NUM_LABELS), jnp.float32)
                  * math.sqrt(2.0 / (HIDDEN + NUM_LABELS))),
        "cls_b": jnp.zeros((1, NUM_LABELS), jnp.float32),
    }
    return params


# ---------------- forward pass (glue: embedding gather + fused kernel) --------
def bert_for_sequence_classification(params, input_ids, token_type_ids, attention_mask):
    B, S = input_ids.shape
    # embedding lookups (data-dependent gather) stay in plain JAX glue
    emb = (params["word_emb"][input_ids]
           + params["pos_emb"][jnp.arange(S)][None, :, :]
           + params["type_emb"][token_type_ids])
    emb2d = emb.reshape(B * S, HIDDEN).astype(jnp.float32)

    # extended attention mask -> additive bias (B, 1, S), broadcast in-kernel
    mask_bias = ((1.0 - attention_mask.astype(jnp.float32)) * -10000.0
                 ).reshape(B, 1, S)

    return bert_pallas_call(emb2d, mask_bias, params)


if __name__ == "__main__":
    root = jax.random.PRNGKey(0)
    k_params, k_ids = jax.random.split(root)

    params = init_params(k_params)
    input_ids = jax.random.randint(k_ids, (BATCH, SEQ), 0, VOCAB, dtype=jnp.int32)
    token_type_ids = jnp.zeros((BATCH, SEQ), dtype=jnp.int32)
    attention_mask = jnp.ones((BATCH, SEQ), dtype=jnp.int32)

    fwd = jax.jit(bert_for_sequence_classification)
    probs = fwd(params, input_ids, token_type_ids, attention_mask)
    probs = jax.block_until_ready(probs)

    assert probs.shape == (BATCH, NUM_LABELS)
    assert bool(jnp.all(jnp.isfinite(probs)))
    # softmax rows must sum to ~1
    assert bool(jnp.all(jnp.abs(jnp.sum(probs, axis=-1) - 1.0) < 1e-4))
    print("KERNEL_OK")
</pallas_src>

<mosaic_0001>
module attributes {stable_mosaic.version = 11 : i64} {
  func.func @bert_stack_kernel(%arg0: i32, %arg1: i32, %arg2: memref<8x128xf32, #tpu.memory_space<vmem>>, %arg3: memref<1x1x8xf32, #tpu.memory_space<vmem>>, %arg4: memref<1x128xf32, #tpu.memory_space<vmem>>, %arg5: memref<1x128xf32, #tpu.memory_space<vmem>>, %arg6: memref<1x128x384xbf16, #tpu.memory_space<vmem>>, %arg7: memref<1x1x384xf32, #tpu.memory_space<vmem>>, %arg8: memref<1x128x128xbf16, #tpu.memory_space<vmem>>, %arg9: memref<1x1x128xf32, #tpu.memory_space<vmem>>, %arg10: memref<1x1x128xf32, #tpu.memory_space<vmem>>, %arg11: memref<1x1x128xf32, #tpu.memory_space<vmem>>, %arg12: memref<1x128x256xbf16, #tpu.memory_space<vmem>>, %arg13: memref<1x1x256xf32, #tpu.memory_space<vmem>>, %arg14: memref<1x256x128xbf16, #tpu.memory_space<vmem>>, %arg15: memref<1x1x128xf32, #tpu.memory_space<vmem>>, %arg16: memref<1x1x128xf32, #tpu.memory_space<vmem>>, %arg17: memref<1x1x128xf32, #tpu.memory_space<vmem>>, %arg18: memref<128x128xf32, #tpu.memory_space<vmem>>, %arg19: memref<1x128xf32, #tpu.memory_space<vmem>>, %arg20: memref<128x3xf32, #tpu.memory_space<vmem>>, %arg21: memref<1x3xf32, #tpu.memory_space<vmem>>, %arg22: memref<1x1x3xf32, #tpu.memory_space<vmem>>, %arg23: memref<8x128xf32, #tpu.memory_space<vmem>>) attributes {dimension_semantics = [#tpu.dimension_semantics<parallel>, #tpu.dimension_semantics<arbitrary>], iteration_bounds = array<i64: 2, 2>, scalar_prefetch = 0 : i64, scratch_operands = 1 : i64, tpu.core_type = #tpu.core_type<tc>, window_params = [{transform_indices = @transform_0, window_bounds = array<i64: 8, 128>}, {transform_indices = @transform_1, window_bounds = array<i64: 1, 1, 8>}, {pipeline_mode = #tpu.pipeline_mode<synchronous>, transform_indices = @transform_2, window_bounds = array<i64: 1, 128>}, {pipeline_mode = #tpu.pipeline_mode<synchronous>, transform_indices = @transform_3, window_bounds = array<i64: 1, 128>}, {transform_indices = @transform_4, window_bounds = array<i64: 1, 128, 384>}, {transform_indices = @transform_5, window_bounds = array<i64: 1, 1, 384>}, {transform_indices = @transform_6, window_bounds = array<i64: 1, 128, 128>}, {transform_indices = @transform_7, window_bounds = array<i64: 1, 1, 128>}, {transform_indices = @transform_8, window_bounds = array<i64: 1, 1, 128>}, {transform_indices = @transform_9, window_bounds = array<i64: 1, 1, 128>}, {transform_indices = @transform_10, window_bounds = array<i64: 1, 128, 256>}, {transform_indices = @transform_11, window_bounds = array<i64: 1, 1, 256>}, {transform_indices = @transform_12, window_bounds = array<i64: 1, 256, 128>}, {transform_indices = @transform_13, window_bounds = array<i64: 1, 1, 128>}, {transform_indices = @transform_14, window_bounds = array<i64: 1, 1, 128>}, {transform_indices = @transform_15, window_bounds = array<i64: 1, 1, 128>}, {pipeline_mode = #tpu.pipeline_mode<synchronous>, transform_indices = @transform_16, window_bounds = array<i64: 128, 128>}, {pipeline_mode = #tpu.pipeline_mode<synchronous>, transform_indices = @transform_17, window_bounds = array<i64: 1, 128>}, {pipeline_mode = #tpu.pipeline_mode<synchronous>, transform_indices = @transform_18, window_bounds = array<i64: 128, 3>}, {pipeline_mode = #tpu.pipeline_mode<synchronous>, transform_indices = @transform_19, window_bounds = array<i64: 1, 3>}, {transform_indices = @transform_20, window_bounds = array<i64: 1, 1, 3>}]} {
    %c0_i32 = arith.constant 0 : i32
    %0 = arith.cmpi eq, %arg1, %c0_i32 : i32
    %1 = arith.extui %0 : i1 to i32
    %c0_i32_0 = arith.constant 0 : i32
    %2 = arith.cmpi ne, %1, %c0_i32_0 : i32
    scf.if %2 {
      %c0_66 = arith.constant 0 : index
      %c0_67 = arith.constant 0 : index
      %153 = vector.load %arg2[%c0_66, %c0_67] : memref<8x128xf32, #tpu.memory_space<vmem>>, vector<8x128xf32>
      %c0_68 = arith.constant 0 : index
      %c0_69 = arith.constant 0 : index
      %154 = vector.load %arg4[%c0_68, %c0_69] : memref<1x128xf32, #tpu.memory_space<vmem>>, vector<1x128xf32>
      %c0_70 = arith.constant 0 : index
      %c0_71 = arith.constant 0 : index
      %155 = vector.load %arg5[%c0_70, %c0_71] : memref<1x128xf32, #tpu.memory_space<vmem>>, vector<1x128xf32>
      %cst_72 = arith.constant dense<0.000000e+00> : vector<8xf32>
      %156 = vector.multi_reduction <add>, %153, %cst_72 [1] : vector<8x128xf32> to vector<8xf32>
      %157 = vector.shape_cast %156 : vector<8xf32> to vector<8x1xf32>
      %cst_73 = arith.constant 1.280000e+02 : f32
      %158 = vector.broadcast %cst_73 : f32 to vector<8x1xf32>
      %159 = arith.divf %157, %158 : vector<8x1xf32>
      %160 = vector.broadcast %159 : vector<8x1xf32> to vector<8x128xf32>
      %161 = arith.subf %153, %160 : vector<8x128xf32>
      %162 = arith.mulf %161, %161 : vector<8x128xf32>
      %cst_74 = arith.constant dense<0.000000e+00> : vector<8xf32>
      %163 = vector.multi_reduction <add>, %162, %cst_74 [1] : vector<8x128xf32> to vector<8xf32>
      %164 = vector.shape_cast %163 : vector<8xf32> to vector<8x1xf32>
      %cst_75 = arith.constant 1.280000e+02 : f32
      %165 = vector.broadcast %cst_75 : f32 to vector<8x1xf32>
      %166 = arith.divf %164, %165 : vector<8x1xf32>
      %167 = vector.broadcast %159 : vector<8x1xf32> to vector<8x128xf32>
      %168 = arith.subf %153, %167 : vector<8x128xf32>
      %cst_76 = arith.constant 9.99999996E-13 : f32
      %169 = vector.broadcast %cst_76 : f32 to vector<8x1xf32>
      %170 = arith.addf %166, %169 : vector<8x1xf32>
      %171 = math.rsqrt %170 : vector<8x1xf32>
      %172 = vector.broadcast %171 : vector<8x1xf32> to vector<8x128xf32>
      %173 = arith.mulf %168, %172 : vector<8x128xf32>
      %174 = vector.broadcast %154 : vector<1x128xf32> to vector<8x128xf32>
      %175 = arith.mulf %173, %174 : vector<8x128xf32>
      %176 = vector.broadcast %155 : vector<1x128xf32> to vector<8x128xf32>
      %177 = arith.addf %175, %176 : vector<8x128xf32>
      %c0_77 = arith.constant 0 : index
      %c0_78 = arith.constant 0 : index
      %178 = vector.load %arg23[%c0_77, %c0_78] : memref<8x128xf32, #tpu.memory_space<vmem>>, vector<8x128xf32>
      tpu.vector_store %arg23[%c0_77, %c0_78], %177 {strides = array<i32>} : memref<8x128xf32, #tpu.memory_space<vmem>>, vector<8x128xf32>,
    } else {
    }
    %c0 = arith.constant 0 : index
    %c0_1 = arith.constant 0 : index
    %3 = vector.load %arg23[%c0, %c0_1] : memref<8x128xf32, #tpu.memory_space<vmem>>, vector<8x128xf32>
    %4 = arith.truncf %3 : vector<8x128xf32> to vector<8x128xbf16>
    %c0_2 = arith.constant 0 : index
    %c0_3 = arith.constant 0 : index
    %c0_4 = arith.constant 0 : index
    %5 = vector.load %arg6[%c0_2, %c0_3, %c0_4] : memref<1x128x384xbf16, #tpu.memory_space<vmem>>, vector<1x128x384xbf16>
    %6 = vector.shape_cast %5 : vector<1x128x384xbf16> to vector<128x384xbf16>
    %cst = arith.constant dense<0.000000e+00> : vector<8x384xf32>
    %7 = tpu.matmul %4, %6, %cst {dimension_numbers = #tpu.dot_dimension_numbers<[1], [0], [0], [1], [0, 0, 1, 1], [], []>} : vector<8x128xbf16>, vector<128x384xbf16>, vector<8x384xf32> -> vector<8x384xf32>
    %c0_5 = arith.constant 0 : index
    %c0_6 = arith.constant 0 : index
    %c0_7 = arith.constant 0 : index
    %8 = vector.load %arg7[%c0_5, %c0_6, %c0_7] : memref<1x1x384xf32, #tpu.memory_space<vmem>>, vector<1x1x384xf32>
    %9 = vector.shape_cast %8 : vector<1x1x384xf32> to vector<1x384xf32>
    %10 = vector.broadcast %9 : vector<1x384xf32> to vector<8x384xf32>
    %11 = arith.addf %7, %10 : vector<8x384xf32>
    %12 = vector.extract_strided_slice %11 {offsets = [0, 0], sizes = [8, 128], strides = [1, 1]} : vector<8x384xf32> to vector<8x128xf32>
    %13 = vector.extract_strided_slice %11 {offsets = [0, 128], sizes = [8, 128], strides = [1, 1]} : vector<8x384xf32> to vector<8x128xf32>
    %14 = vector.extract_strided_slice %11 {offsets = [0, 256], sizes = [8, 128], strides = [1, 1]} : vector<8x384xf32> to vector<8x128xf32>
    %15 = vector.extract_strided_slice %12 {offsets = [0, 0], sizes = [8, 64], strides = [1, 1]} : vector<8x128xf32> to vector<8x64xf32>
    %16 = vector.extract_strided_slice %12 {offsets = [0, 64], sizes = [8, 64], strides = [1, 1]} : vector<8x128xf32> to vector<8x64xf32>
    %17 = vector.shape_cast %15 : vector<8x64xf32> to vector<1x8x64xf32>
    %18 = vector.shape_cast %16 : vector<8x64xf32> to vector<1x8x64xf32>
    %19 = tpu.concatenate %17, %18 in 0 : vector<1x8x64xf32>, vector<1x8x64xf32> -> vector<2x8x64xf32>
    %20 = arith.truncf %19 : vector<2x8x64xf32> to vector<2x8x64xbf16>
    %21 = vector.extract_strided_slice %13 {offsets = [0, 0], sizes = [8, 64], strides = [1, 1]} : vector<8x128xf32> to vector<8x64xf32>
    %22 = vector.extract_strided_slice %13 {offsets = [0, 64], sizes = [8, 64], strides = [1, 1]} : vector<8x128xf32> to vector<8x64xf32>
    %23 = vector.shape_cast %21 : vector<8x64xf32> to vector<1x8x64xf32>
    %24 = vector.shape_cast %22 : vector<8x64xf32> to vector<1x8x64xf32>
    %25 = tpu.concatenate %23, %24 in 0 : vector<1x8x64xf32>, vector<1x8x64xf32> -> vector<2x8x64xf32>
    %26 = arith.truncf %25 : vector<2x8x64xf32> to vector<2x8x64xbf16>
    %27 = vector.extract_strided_slice %14 {offsets = [0, 0], sizes = [8, 64], strides = [1, 1]} : vector<8x128xf32> to vector<8x64xf32>
    %28 = vector.extract_strided_slice %14 {offsets = [0, 64], sizes = [8, 64], strides = [1, 1]} : vector<8x128xf32> to vector<8x64xf32>
    %29 = vector.shape_cast %27 : vector<8x64xf32> to vector<1x8x64xf32>
    %30 = vector.shape_cast %28 : vector<8x64xf32> to vector<1x8x64xf32>
    %31 = tpu.concatenate %29, %30 in 0 : vector<1x8x64xf32>, vector<1x8x64xf32> -> vector<2x8x64xf32>
    %32 = arith.truncf %31 : vector<2x8x64xf32> to vector<2x8x64xbf16>
    %c0_8 = arith.constant 0 : index
    %c0_9 = arith.constant 0 : index
    %c0_10 = arith.constant 0 : index
    %33 = vector.load %arg3[%c0_8, %c0_9, %c0_10] : memref<1x1x8xf32, #tpu.memory_space<vmem>>, vector<1x1x8xf32>
    %34 = vector.shape_cast %33 : vector<1x1x8xf32> to vector<1x8xf32>
    %35 = vector.shape_cast %34 : vector<1x8xf32> to vector<1x1x8xf32>
    "tpu.trace_start"() <{level = 10 : i32, message = "nqd,nkd->nqk"}> : () -> ()
    %cst_11 = arith.constant dense<0.000000e+00> : vector<2x8x8xf32>
    %36 = tpu.matmul %20, %26, %cst_11 {dimension_numbers = #tpu.dot_dimension_numbers<[2], [2], [1], [1], [0, 0, 0, 1, 1, 1], [0], [0]>} : vector<2x8x64xbf16>, vector<2x8x64xbf16>, vector<2x8x8xf32> -> vector<2x8x8xf32>
    "tpu.trace_stop"() : () -> ()
    %cst_12 = arith.constant 1.250000e-01 : f32
    %37 = vector.broadcast %cst_12 : f32 to vector<2x8x8xf32>
    %38 = arith.mulf %36, %37 : vector<2x8x8xf32>
    %39 = vector.broadcast %35 : vector<1x1x8xf32> to vector<2x8x8xf32>
    %40 = arith.addf %38, %39 : vector<2x8x8xf32>
    %cst_13 = arith.constant dense<0xFF800000> : vector<2x8xf32>
    %41 = vector.multi_reduction <maximumf>, %40, %cst_13 [2] : vector<2x8x8xf32> to vector<2x8xf32>
    %42 = vector.shape_cast %41 : vector<2x8xf32> to vector<2x8x1xf32>
    %43 = vector.broadcast %42 : vector<2x8x1xf32> to vector<2x8x8xf32>
    %44 = arith.subf %40, %43 : vector<2x8x8xf32>
    %45 = math.exp %44 : vector<2x8x8xf32>
    %cst_14 = arith.constant dense<0.000000e+00> : vector<2x8xf32>
    %46 = vector.multi_reduction <add>, %45, %cst_14 [2] : vector<2x8x8xf32> to vector<2x8xf32>
    %47 = vector.shape_cast %46 : vector<2x8xf32> to vector<2x8x1xf32>
    %48 = tpu.reciprocal %47 {approx = true} : vector<2x8x1xf32> -> vector<2x8x1xf32>
    %49 = vector.broadcast %48 : vector<2x8x1xf32> to vector<2x8x8xf32>
    %50 = arith.mulf %45, %49 : vector<2x8x8xf32>
    %51 = arith.truncf %50 : vector<2x8x8xf32> to vector<2x8x8xbf16>
    "tpu.trace_start"() <{level = 10 : i32, message = "nqk,nkd->nqd"}> : () -> ()
    %cst_15 = arith.constant dense<0.000000e+00> : vector<2x8x64xf32>
    %52 = tpu.matmul %51, %32, %cst_15 {dimension_numbers = #tpu.dot_dimension_numbers<[2], [1], [1], [2], [0, 0, 0, 1, 1, 2], [0], [0]>} : vector<2x8x8xbf16>, vector<2x8x64xbf16>, vector<2x8x64xf32> -> vector<2x8x64xf32>
    "tpu.trace_stop"() : () -> ()
    %53 = vector.extract_strided_slice %52 {offsets = [0, 0, 0], sizes = [1, 8, 64], strides = [1, 1, 1]} : vector<2x8x64xf32> to vector<1x8x64xf32>
    %54 = vector.shape_cast %53 : vector<1x8x64xf32> to vector<8x64xf32>
    %55 = vector.extract_strided_slice %52 {offsets = [1, 0, 0], sizes = [1, 8, 64], strides = [1, 1, 1]} : vector<2x8x64xf32> to vector<1x8x64xf32>
    %56 = vector.shape_cast %55 : vector<1x8x64xf32> to vector<8x64xf32>
    %57 = tpu.concatenate %54, %56 in 1 : vector<8x64xf32>, vector<8x64xf32> -> vector<8x128xf32>
    %58 = arith.truncf %57 : vector<8x128xf32> to vector<8x128xbf16>
    %c0_16 = arith.constant 0 : index
    %c0_17 = arith.constant 0 : index
    %c0_18 = arith.constant 0 : index
    %59 = vector.load %arg8[%c0_16, %c0_17, %c0_18] : memref<1x128x128xbf16, #tpu.memory_space<vmem>>, vector<1x128x128xbf16>
    %60 = vector.shape_cast %59 : vector<1x128x128xbf16> to vector<128x128xbf16>
    %cst_19 = arith.constant dense<0.000000e+00> : vector<8x128xf32>
    %61 = tpu.matmul %58, %60, %cst_19 {dimension_numbers = #tpu.dot_dimension_numbers<[1], [0], [0], [1], [0, 0, 1, 1], [], []>} : vector<8x128xbf16>, vector<128x128xbf16>, vector<8x128xf32> -> vector<8x128xf32>
    %c0_20 = arith.constant 0 : index
    %c0_21 = arith.constant 0 : index
    %c0_22 = arith.constant 0 : index
    %62 = vector.load %arg9[%c0_20, %c0_21, %c0_22] : memref<1x1x128xf32, #tpu.memory_space<vmem>>, vector<1x1x128xf32>
    %63 = vector.shape_cast %62 : vector<1x1x128xf32> to vector<1x128xf32>
    %64 = vector.broadcast %63 : vector<1x128xf32> to vector<8x128xf32>
    %65 = arith.addf %61, %64 : vector<8x128xf32>
    %66 = arith.addf %3, %65 : vector<8x128xf32>
    %c0_23 = arith.constant 0 : index
    %c0_24 = arith.constant 0 : index
    %c0_25 = arith.constant 0 : index
    %67 = vector.load %arg10[%c0_23, %c0_24, %c0_25] : memref<1x1x128xf32, #tpu.memory_space<vmem>>, vector<1x1x128xf32>
    %68 = vector.shape_cast %67 : vector<1x1x128xf32> to vector<1x128xf32>
    %c0_26 = arith.constant 0 : index
    %c0_27 = arith.constant 0 : index
    %c0_28 = arith.constant 0 : index
    %69 = vector.load %arg11[%c0_26, %c0_27, %c0_28] : memref<1x1x128xf32, #tpu.memory_space<vmem>>, vector<1x1x128xf32>
    %70 = vector.shape_cast %69 : vector<1x1x128xf32> to vector<1x128xf32>
    %cst_29 = arith.constant dense<0.000000e+00> : vector<8xf32>
    %71 = vector.multi_reduction <add>, %66, %cst_29 [1] : vector<8x128xf32> to vector<8xf32>
    %72 = vector.shape_cast %71 : vector<8xf32> to vector<8x1xf32>
    %cst_30 = arith.constant 1.280000e+02 : f32
    %73 = vector.broadcast %cst_30 : f32 to vector<8x1xf32>
    %74 = arith.divf %72, %73 : vector<8x1xf32>
    %75 = vector.broadcast %74 : vector<8x1xf32> to vector<8x128xf32>
    %76 = arith.subf %66, %75 : vector<8x128xf32>
    %77 = arith.mulf %76, %76 : vector<8x128xf32>
    %cst_31 = arith.constant dense<0.000000e+00> : vector<8xf32>
    %78 = vector.multi_reduction <add>, %77, %cst_31 [1] : vector<8x128xf32> to vector<8xf32>
    %79 = vector.shape_cast %78 : vector<8xf32> to vector<8x1xf32>
    %cst_32 = arith.constant 1.280000e+02 : f32
    %80 = vector.broadcast %cst_32 : f32 to vector<8x1xf32>
    %81 = arith.divf %79, %80 : vector<8x1xf32>
    %82 = vector.broadcast %74 : vector<8x1xf32> to vector<8x128xf32>
    %83 = arith.subf %66, %82 : vector<8x128xf32>
    %cst_33 = arith.constant 9.99999996E-13 : f32
    %84 = vector.broadcast %cst_33 : f32 to vector<8x1xf32>
    %85 = arith.addf %81, %84 : vector<8x1xf32>
    %86 = math.rsqrt %85 : vector<8x1xf32>
    %87 = vector.broadcast %86 : vector<8x1xf32> to vector<8x128xf32>
    %88 = arith.mulf %83, %87 : vector<8x128xf32>
    %89 = vector.broadcast %68 : vector<1x128xf32> to vector<8x128xf32>
    %90 = arith.mulf %88, %89 : vector<8x128xf32>
    %91 = vector.broadcast %70 : vector<1x128xf32> to vector<8x128xf32>
    %92 = arith.addf %90, %91 : vector<8x128xf32>
    %93 = arith.truncf %92 : vector<8x128xf32> to vector<8x128xbf16>
    %c0_34 = arith.constant 0 : index
    %c0_35 = arith.constant 0 : index
    %c0_36 = arith.constant 0 : index
    %94 = vector.load %arg12[%c0_34, %c0_35, %c0_36] : memref<1x128x256xbf16, #tpu.memory_space<vmem>>, vector<1x128x256xbf16>
    %95 = vector.shape_cast %94 : vector<1x128x256xbf16> to vector<128x256xbf16>
    %cst_37 = arith.constant dense<0.000000e+00> : vector<8x256xf32>
    %96 = tpu.matmul %93, %95, %cst_37 {dimension_numbers = #tpu.dot_dimension_numbers<[1], [0], [0], [1], [0, 0, 1, 1], [], []>} : vector<8x128xbf16>, vector<128x256xbf16>, vector<8x256xf32> -> vector<8x256xf32>
    %c0_38 = arith.constant 0 : index
    %c0_39 = arith.constant 0 : index
    %c0_40 = arith.constant 0 : index
    %97 = vector.load %arg13[%c0_38, %c0_39, %c0_40] : memref<1x1x256xf32, #tpu.memory_space<vmem>>, vector<1x1x256xf32>
    %98 = vector.shape_cast %97 : vector<1x1x256xf32> to vector<1x256xf32>
    %99 = vector.broadcast %98 : vector<1x256xf32> to vector<8x256xf32>
    %100 = arith.addf %96, %99 : vector<8x256xf32>
    %cst_41 = arith.constant 5.000000e-01 : f32
    %101 = vector.broadcast %cst_41 : f32 to vector<8x256xf32>
    %102 = arith.mulf %101, %100 : vector<8x256xf32>
    %cst_42 = arith.constant 4.471500e-02 : f32
    %103 = vector.broadcast %cst_42 : f32 to vector<8x256xf32>
    %104 = arith.mulf %103, %100 : vector<8x256xf32>
    %105 = arith.mulf %104, %100 : vector<8x256xf32>
    %106 = arith.mulf %105, %100 : vector<8x256xf32>
    %107 = arith.addf %100, %106 : vector<8x256xf32>
    %cst_43 = arith.constant 0.797884583 : f32
    %108 = vector.broadcast %cst_43 : f32 to vector<8x256xf32>
    %109 = arith.mulf %108, %107 : vector<8x256xf32>
    %110 = math.tanh %109 : vector<8x256xf32>
    %cst_44 = arith.constant 1.000000e+00 : f32
    %111 = vector.broadcast %cst_44 : f32 to vector<8x256xf32>
    %112 = arith.addf %111, %110 : vector<8x256xf32>
    %113 = arith.mulf %102, %112 : vector<8x256xf32>
    %114 = arith.truncf %113 : vector<8x256xf32> to vector<8x256xbf16>
    %c0_45 = arith.constant 0 : index
    %c0_46 = arith.constant 0 : index
    %c0_47 = arith.constant 0 : index
    %115 = vector.load %arg14[%c0_45, %c0_46, %c0_47] : memref<1x256x128xbf16, #tpu.memory_space<vmem>>, vector<1x256x128xbf16>
    %116 = vector.shape_cast %115 : vector<1x256x128xbf16> to vector<256x128xbf16>
    %cst_48 = arith.constant dense<0.000000e+00> : vector<8x128xf32>
    %117 = tpu.matmul %114, %116, %cst_48 {dimension_numbers = #tpu.dot_dimension_numbers<[1], [0], [0], [1], [0, 0, 1, 1], [], []>} : vector<8x256xbf16>, vector<256x128xbf16>, vector<8x128xf32> -> vector<8x128xf32>
    %c0_49 = arith.constant 0 : index
    %c0_50 = arith.constant 0 : index
    %c0_51 = arith.constant 0 : index
    %118 = vector.load %arg15[%c0_49, %c0_50, %c0_51] : memref<1x1x128xf32, #tpu.memory_space<vmem>>, vector<1x1x128xf32>
    %119 = vector.shape_cast %118 : vector<1x1x128xf32> to vector<1x128xf32>
    %120 = vector.broadcast %119 : vector<1x128xf32> to vector<8x128xf32>
    %121 = arith.addf %117, %120 : vector<8x128xf32>
    %122 = arith.addf %92, %121 : vector<8x128xf32>
    %c0_52 = arith.constant 0 : index
    %c0_53 = arith.constant 0 : index
    %c0_54 = arith.constant 0 : index
    %123 = vector.load %arg16[%c0_52, %c0_53, %c0_54] : memref<1x1x128xf32, #tpu.memory_space<vmem>>, vector<1x1x128xf32>
    %124 = vector.shape_cast %123 : vector<1x1x128xf32> to vector<1x128xf32>
    %c0_55 = arith.constant 0 : index
    %c0_56 = arith.constant 0 : index
    %c0_57 = arith.constant 0 : index
    %125 = vector.load %arg17[%c0_55, %c0_56, %c0_57] : memref<1x1x128xf32, #tpu.memory_space<vmem>>, vector<1x1x128xf32>
    %126 = vector.shape_cast %125 : vector<1x1x128xf32> to vector<1x128xf32>
    %cst_58 = arith.constant dense<0.000000e+00> : vector<8xf32>
    %127 = vector.multi_reduction <add>, %122, %cst_58 [1] : vector<8x128xf32> to vector<8xf32>
    %128 = vector.shape_cast %127 : vector<8xf32> to vector<8x1xf32>
    %cst_59 = arith.constant 1.280000e+02 : f32
    %129 = vector.broadcast %cst_59 : f32 to vector<8x1xf32>
    %130 = arith.divf %128, %129 : vector<8x1xf32>
    %131 = vector.broadcast %130 : vector<8x1xf32> to vector<8x128xf32>
    %132 = arith.subf %122, %131 : vector<8x128xf32>
    %133 = arith.mulf %132, %132 : vector<8x128xf32>
    %cst_60 = arith.constant dense<0.000000e+00> : vector<8xf32>
    %134 = vector.multi_reduction <add>, %133, %cst_60 [1] : vector<8x128xf32> to vector<8xf32>
    %135 = vector.shape_cast %134 : vector<8xf32> to vector<8x1xf32>
    %cst_61 = arith.constant 1.280000e+02 : f32
    %136 = vector.broadcast %cst_61 : f32 to vector<8x1xf32>
    %137 = arith.divf %135, %136 : vector<8x1xf32>
    %138 = vector.broadcast %130 : vector<8x1xf32> to vector<8x128xf32>
    %139 = arith.subf %122, %138 : vector<8x128xf32>
    %cst_62 = arith.constant 9.99999996E-13 : f32
    %140 = vector.broadcast %cst_62 : f32 to vector<8x1xf32>
    %141 = arith.addf %137, %140 : vector<8x1xf32>
    %142 = math.rsqrt %141 : vector<8x1xf32>
    %143 = vector.broadcast %142 : vector<8x1xf32> to vector<8x128xf32>
    %144 = arith.mulf %139, %143 : vector<8x128xf32>
    %145 = vector.broadcast %124 : vector<1x128xf32> to vector<8x128xf32>
    %146 = arith.mulf %144, %145 : vector<8x128xf32>
    %147 = vector.broadcast %126 : vector<1x128xf32> to vector<8x128xf32>
    %148 = arith.addf %146, %147 : vector<8x128xf32>
    %c0_63 = arith.constant 0 : index
    %c0_64 = arith.constant 0 : index
    %149 = vector.load %arg23[%c0_63, %c0_64] : memref<8x128xf32, #tpu.memory_space<vmem>>, vector<8x128xf32>
    tpu.vector_store %arg23[%c0_63, %c0_64], %148 {strides = array<i32>} : memref<8x128xf32, #tpu.memory_space<vmem>>, vector<8x128xf32>,
    %c1_i32 = arith.constant 1 : i32
    %150 = arith.cmpi eq, %arg1, %c1_i32 : i32
    %151 = arith.extui %150 : i1 to i32
    %c0_i32_65 = arith.constant 0 : i32
    %152 = arith.cmpi ne, %151, %c0_i32_65 : i32
    scf.if %152 {
      %153 = vector.extract_strided_slice %148 {offsets = [0, 0], sizes = [1, 128], strides = [1, 1]} : vector<8x128xf32> to vector<1x128xf32>
      %c0_66 = arith.constant 0 : index
      %c0_67 = arith.constant 0 : index
      %154 = vector.load %arg18[%c0_66, %c0_67] : memref<128x128xf32, #tpu.memory_space<vmem>>, vector<128x128xf32>
      %cst_68 = arith.constant dense<0.000000e+00> : vector<1x128xf32>
      %155 = tpu.matmul %153, %154, %cst_68 {dimension_numbers = #tpu.dot_dimension_numbers<[1], [0], [0], [1], [0, 0, 1, 1], [], []>} : vector<1x128xf32>, vector<128x128xf32>, vector<1x128xf32> -> vector<1x128xf32>
      %c0_69 = arith.constant 0 : index
      %c0_70 = arith.constant 0 : index
      %156 = vector.load %arg19[%c0_69, %c0_70] : memref<1x128xf32, #tpu.memory_space<vmem>>, vector<1x128xf32>
      %157 = arith.addf %155, %156 : vector<1x128xf32>
      %158 = math.tanh %157 : vector<1x128xf32>
      %c0_71 = arith.constant 0 : index
      %c0_72 = arith.constant 0 : index
      %159 = vector.load %arg20[%c0_71, %c0_72] : memref<128x3xf32, #tpu.memory_space<vmem>>, vector<128x3xf32>
      %cst_73 = arith.constant dense<0.000000e+00> : vector<1x3xf32>
      %160 = tpu.matmul %158, %159, %cst_73 {dimension_numbers = #tpu.dot_dimension_numbers<[1], [0], [0], [1], [0, 0, 1, 1], [], []>} : vector<1x128xf32>, vector<128x3xf32>, vector<1x3xf32> -> vector<1x3xf32>
      %c0_74 = arith.constant 0 : index
      %c0_75 = arith.constant 0 : index
      %161 = vector.load %arg21[%c0_74, %c0_75] : memref<1x3xf32, #tpu.memory_space<vmem>>, vector<1x3xf32>
      %162 = arith.addf %160, %161 : vector<1x3xf32>
      %cst_76 = arith.constant dense<0xFF800000> : vector<1xf32>
      %163 = vector.multi_reduction <maximumf>, %162, %cst_76 [1] : vector<1x3xf32> to vector<1xf32>
      %164 = vector.shape_cast %163 : vector<1xf32> to vector<1x1xf32>
      %165 = vector.broadcast %164 : vector<1x1xf32> to vector<1x3xf32>
      %166 = arith.subf %162, %165 : vector<1x3xf32>
      %167 = math.exp %166 : vector<1x3xf32>
      %cst_77 = arith.constant dense<0.000000e+00> : vector<1xf32>
      %168 = vector.multi_reduction <add>, %167, %cst_77 [1] : vector<1x3xf32> to vector<1xf32>
      %169 = vector.shape_cast %168 : vector<1xf32> to vector<1x1xf32>
      %170 = vector.broadcast %169 : vector<1x1xf32> to vector<1x3xf32>
      %171 = arith.divf %167, %170 : vector<1x3xf32>
      %172 = vector.shape_cast %171 : vector<1x3xf32> to vector<1x1x3xf32>
      %c0_78 = arith.constant 0 : index
      %c0_79 = arith.constant 0 : index
      %c0_80 = arith.constant 0 : index
      %173 = vector.load %arg22[%c0_78, %c0_79, %c0_80] : memref<1x1x3xf32, #tpu.memory_space<vmem>>, vector<1x1x3xf32>
      tpu.vector_store %arg22[%c0_78, %c0_79, %c0_80], %172 {strides = array<i32>} : memref<1x1x3xf32, #tpu.memory_space<vmem>>, vector<1x1x3xf32>,
    } else {
    }
    return
  }
  func.func @transform_0(%arg0: i32, %arg1: i32) -> (i32, i32) {
    %c0_i32 = arith.constant 0 : i32
    %c0_i32_0 = arith.constant 0 : i32
    return %arg0, %c0_i32 : i32, i32
  }
  func.func @transform_1(%arg0: i32, %arg1: i32) -> (i32, i32, i32) {
    %c0_i32 = arith.constant 0 : i32
    %c0_i32_0 = arith.constant 0 : i32
    %c0_i32_1 = arith.constant 0 : i32
    return %arg0, %c0_i32, %c0_i32_0 : i32, i32, i32
  }
  func.func @transform_2(%arg0: i32, %arg1: i32) -> (i32, i32) {
    %c0_i32 = arith.constant 0 : i32
    %c0_i32_0 = arith.constant 0 : i32
    %c0_i32_1 = arith.constant 0 : i32
    return %c0_i32, %c0_i32_0 : i32, i32
  }
  func.func @transform_3(%arg0: i32, %arg1: i32) -> (i32, i32) {
    %c0_i32 = arith.constant 0 : i32
    %c0_i32_0 = arith.constant 0 : i32
    %c0_i32_1 = arith.constant 0 : i32
    return %c0_i32, %c0_i32_0 : i32, i32
  }
  func.func @transform_4(%arg0: i32, %arg1: i32) -> (i32, i32, i32) {
    %c0_i32 = arith.constant 0 : i32
    %c0_i32_0 = arith.constant 0 : i32
    %c0_i32_1 = arith.constant 0 : i32
    return %arg1, %c0_i32, %c0_i32_0 : i32, i32, i32
  }
  func.func @transform_5(%arg0: i32, %arg1: i32) -> (i32, i32, i32) {
    %c0_i32 = arith.constant 0 : i32
    %c0_i32_0 = arith.constant 0 : i32
    %c0_i32_1 = arith.constant 0 : i32
    return %arg1, %c0_i32, %c0_i32_0 : i32, i32, i32
  }
  func.func @transform_6(%arg0: i32, %arg1: i32) -> (i32, i32, i32) {
    %c0_i32 = arith.constant 0 : i32
    %c0_i32_0 = arith.constant 0 : i32
    %c0_i32_1 = arith.constant 0 : i32
    return %arg1, %c0_i32, %c0_i32_0 : i32, i32, i32
  }
  func.func @transform_7(%arg0: i32, %arg1: i32) -> (i32, i32, i32) {
    %c0_i32 = arith.constant 0 : i32
    %c0_i32_0 = arith.constant 0 : i32
    %c0_i32_1 = arith.constant 0 : i32
    return %arg1, %c0_i32, %c0_i32_0 : i32, i32, i32
  }
  func.func @transform_8(%arg0: i32, %arg1: i32) -> (i32, i32, i32) {
    %c0_i32 = arith.constant 0 : i32
    %c0_i32_0 = arith.constant 0 : i32
    %c0_i32_1 = arith.constant 0 : i32
    return %arg1, %c0_i32, %c0_i32_0 : i32, i32, i32
  }
  func.func @transform_9(%arg0: i32, %arg1: i32) -> (i32, i32, i32) {
    %c0_i32 = arith.constant 0 : i32
    %c0_i32_0 = arith.constant 0 : i32
    %c0_i32_1 = arith.constant 0 : i32
    return %arg1, %c0_i32, %c0_i32_0 : i32, i32, i32
  }
  func.func @transform_10(%arg0: i32, %arg1: i32) -> (i32, i32, i32) {
    %c0_i32 = arith.constant 0 : i32
    %c0_i32_0 = arith.constant 0 : i32
    %c0_i32_1 = arith.constant 0 : i32
    return %arg1, %c0_i32, %c0_i32_0 : i32, i32, i32
  }
  func.func @transform_11(%arg0: i32, %arg1: i32) -> (i32, i32, i32) {
    %c0_i32 = arith.constant 0 : i32
    %c0_i32_0 = arith.constant 0 : i32
    %c0_i32_1 = arith.constant 0 : i32
    return %arg1, %c0_i32, %c0_i32_0 : i32, i32, i32
  }
  func.func @transform_12(%arg0: i32, %arg1: i32) -> (i32, i32, i32) {
    %c0_i32 = arith.constant 0 : i32
    %c0_i32_0 = arith.constant 0 : i32
    %c0_i32_1 = arith.constant 0 : i32
    return %arg1, %c0_i32, %c0_i32_0 : i32, i32, i32
  }
  func.func @transform_13(%arg0: i32, %arg1: i32) -> (i32, i32, i32) {
    %c0_i32 = arith.constant 0 : i32
    %c0_i32_0 = arith.constant 0 : i32
    %c0_i32_1 = arith.constant 0 : i32
    return %arg1, %c0_i32, %c0_i32_0 : i32, i32, i32
  }
  func.func @transform_14(%arg0: i32, %arg1: i32) -> (i32, i32, i32) {
    %c0_i32 = arith.constant 0 : i32
    %c0_i32_0 = arith.constant 0 : i32
    %c0_i32_1 = arith.constant 0 : i32
    return %arg1, %c0_i32, %c0_i32_0 : i32, i32, i32
  }
  func.func @transform_15(%arg0: i32, %arg1: i32) -> (i32, i32, i32) {
    %c0_i32 = arith.constant 0 : i32
    %c0_i32_0 = arith.constant 0 : i32
    %c0_i32_1 = arith.constant 0 : i32
    return %arg1, %c0_i32, %c0_i32_0 : i32, i32, i32
  }
  func.func @transform_16(%arg0: i32, %arg1: i32) -> (i32, i32) {
    %c0_i32 = arith.constant 0 : i32
    %c0_i32_0 = arith.constant 0 : i32
    %c0_i32_1 = arith.constant 0 : i32
    return %c0_i32, %c0_i32_0 : i32, i32
  }
  func.func @transform_17(%arg0: i32, %arg1: i32) -> (i32, i32) {
    %c0_i32 = arith.constant 0 : i32
    %c0_i32_0 = arith.constant 0 : i32
    %c0_i32_1 = arith.constant 0 : i32
    return %c0_i32, %c0_i32_0 : i32, i32
  }
  func.func @transform_18(%arg0: i32, %arg1: i32) -> (i32, i32) {
    %c0_i32 = arith.constant 0 : i32
    %c0_i32_0 = arith.constant 0 : i32
    %c0_i32_1 = arith.constant 0 : i32
    return %c0_i32, %c0_i32_0 : i32, i32
  }
  func.func @transform_19(%arg0: i32, %arg1: i32) -> (i32, i32) {
    %c0_i32 = arith.constant 0 : i32
    %c0_i32_0 = arith.constant 0 : i32
    %c0_i32_1 = arith.constant 0 : i32
    return %c0_i32, %c0_i32_0 : i32, i32
  }
  func.func @transform_20(%arg0: i32, %arg1: i32) -> (i32, i32, i32) {
    %c0_i32 = arith.constant 0 : i32
    %c0_i32_0 = arith.constant 0 : i32
    %c0_i32_1 = arith.constant 0 : i32
    return %arg0, %c0_i32, %c0_i32_0 : i32, i32, i32
  }
}

</mosaic_0001>

<bundles_post_ra>
// kernel: bert_for_sequence_classification.1
= control target key start
LH: loop header
LB: loop body
LE: loop exit
PB: predicated region body
PF: predicated region fallthrough
CT: control target
= control target key end

     0   :  { %s4880_s0 = inlined_call_operand.vmem [shape: f32[16,128], index: 0, kind: input, shape index: {}]   ;;  %s4881_s1 = inlined_call_operand.vmem [shape: f32[2,1,8], index: 1, kind: input, shape index: {}]   ;;  %s4882_s2 = inlined_call_operand.hbm [shape: f32[1,128], index: 2, kind: input, shape index: {}]   ;;  %s4883_s3 = inlined_call_operand.hbm [shape: f32[1,128], index: 3, kind: input, shape index: {}]   ;;  %s4884_s4 = inlined_call_operand.vmem [shape: bf16[2,128,384], index: 4, kind: input, shape index: {}]   ;;  %s4885_s5 = inlined_call_operand.vmem [shape: f32[2,1,384], index: 5, kind: input, shape index: {}]   ;;  %s4886_s6 = inlined_call_operand.hbm [shape: bf16[2,128,128], index: 6, kind: input, shape index: {}]   ;;  %s4887_s7 = inlined_call_operand.hbm [shape: f32[2,1,128], index: 7, kind: input, shape index: {}]   ;;  %s4888_s8 = inlined_call_operand.hbm [shape: f32[2,1,128], index: 8, kind: input, shape index: {}]   ;;  %s4889_s9 = inlined_call_operand.hbm [shape: f32[2,1,128], index: 9, kind: input, shape index: {}]   ;;  %s4890_s10 = inlined_call_operand.vmem [shape: bf16[2,128,256], index: 10, kind: input, shape index: {}]   ;;  %s4891_s11 = inlined_call_operand.hbm [shape: f32[2,1,256], index: 11, kind: input, shape index: {}]   ;;  %s4892_s12 = inlined_call_operand.hbm [shape: bf16[2,256,128], index: 12, kind: input, shape index: {}]   ;;  %s4893_s13 = inlined_call_operand.hbm [shape: f32[2,1,128], index: 13, kind: input, shape index: {}]   ;;  %s4894_s14 = inlined_call_operand.hbm [shape: f32[2,1,128], index: 14, kind: input, shape index: {}]   ;;  %s4895_s15 = inlined_call_operand.hbm [shape: f32[2,1,128], index: 15, kind: input, shape index: {}]   ;;  %s4896_s16 = inlined_call_operand.hbm [shape: f32[128,128], index: 16, kind: input, shape index: {}]   ;;  %s4897_s17 = inlined_call_operand.hbm [shape: f32[1,128], index: 17, kind: input, shape index: {}]   ;;  %s4898_s18 = inlined_call_operand.vmem [shape: f32[128,3], index: 18, kind: input, shape index: {}]   ;;  %s4899_s19 = inlined_call_operand.hbm [shape: f32[1,3], index: 19, kind: input, shape index: {}]   ;;  %s4900_s20 = inlined_call_operand.hbm [shape: f32[2,1,3], index: 20, kind: output, shape index: {}]  }
   0x1   :  { %4951 = sst [smem:[#allocation45_spill]] %s4880_s0 }
   0x2   :  { %4952 = sst [smem:[#allocation46_spill]] %s4881_s1 }
   0x3   :  { %4953 = sst [smem:[#allocation47_spill]] %s4882_s2 }
   0x4   :  { %4954 = sst [smem:[#allocation48_spill]] %s4883_s3 }
   0x5   :  { %4955 = sst [smem:[#allocation49_spill]] %s4884_s4 }
   0x6   :  { %4956 = sst [smem:[#allocation50_spill]] %s4885_s5 }
   0x7   :  { %4957 = sst [smem:[#allocation51_spill]] %s4886_s6 }
   0x8   :  { %4958 = sst [smem:[#allocation52_spill]] %s4887_s7 }
   0x9   :  { %4959 = sst [smem:[#allocation53_spill]] %s4888_s8 }
   0xa   :  { %4960 = sst [smem:[#allocation54_spill]] %s4889_s9 }
   0xb   :  { %4961 = sst [smem:[#allocation55_spill]] %s4890_s10 }
   0xc   :  { %4962 = sst [smem:[#allocation56_spill]] %s4891_s11 }
   0xd   :  { %4963 = sst [smem:[#allocation57_spill]] %s4892_s12 }
   0xe   :  { %4964 = sst [smem:[#allocation58_spill]] %s4893_s13 }
   0xf   :  { %4965 = sst [smem:[#allocation59_spill]] %s4894_s14 }
  0x10   :  { %4966 = sst [smem:[#allocation60_spill]] %s4895_s15 }
  0x11   :  { %4967 = sst [smem:[#allocation61_spill]] %s4896_s16 }
  0x12   :  { %4968 = sst [smem:[#allocation62_spill]] %s4897_s17 }
  0x13   :  { %4969 = sst [smem:[#allocation63_spill]] %s4898_s18 }
  0x14   :  { %4970 = sst [smem:[#allocation64_spill]] %s4899_s19 }
  0x15   :  { %4971 = sst [smem:[#allocation65_spill]] %s4900_s20 }
  0x16   :  { %25 = vsyncpa [#allocation4], 0 }
  0x17   :  { %26 = vsyncpa [#allocation7], 0 }
  0x18   :  { %27 = vsyncpa [#allocation19], 0 }
  0x19   :  { %28 = vsyncpa [#allocation5], 0 }
  0x1a   :  { %30 = vsyncpa [#allocation5 + $0x1], 0  ;;  %s4028_s1 = smov 0   ;;  %s4030_s22 = smov 0  }
  0x1b   :  { %s4032_s23 = smov 0   ;;  %s4034_s24 = smov 0  }
  0x1c   :  { %s4036_s2 = smov 0   ;;  %s4038_s25 = smov 0  }
  0x1d   :  { %s4040_s3 = smov 0   ;;  %s4042_s26 = smov 0  }
  0x1e   :  { %s4044_s27 = smov 0   ;;  %s4046_s28 = smov 0  }
  0x1f   :  { %s4048_s4 = smov 0  }
  0x20 LB: > { %4972 = sst [smem:[#allocation28_spill]] %s3855_s1  ;;  %s4082_s29 = sadd.s32 4294967295, %s3895_s4   ;;  %s3895_s4 = sphi %s4048_s4, %s36_s4   ;;  %s3891_s28 = sphi %s4046_s28, %s5080_s28   ;;  %s3887_s27 = sphi %s4044_s27, %s5079_s27   ;;  %s3883_s26 = sphi %s4042_s26, %s5078_s26   ;;  %s3879_s3 = sphi %s4040_s3, %s5077_s3   ;;  %s3875_s25 = sphi %s4038_s25, %s5076_s25   ;;  %s3871_s2 = sphi %s4036_s2, %s5075_s2   ;;  %s3867_s24 = sphi %s4034_s24, %s5074_s24   ;;  %s3863_s23 = sphi %s4032_s23, %s5082_s23   ;;  %s3859_s22 = sphi %s4030_s22, %s5081_s22   ;;  %s3855_s1 = sphi %s4028_s1, %s5073_s1  }
  0x21   : > { %4973 = sst [smem:[#allocation29_spill]] %s3859_s22  ;;  %s2651_s30 = sadd.s32 4294967294, %s3895_s4  }
  0x22   : > { %4974 = sst [smem:[#allocation30_spill]] %s3871_s2  ;;  %p208_p0 = scmp.ne.s32.totalorder %s3875_s25, %s3871_s2 }
  0x23   : > { %4975 = sst [smem:[#allocation31_spill]] %s3875_s25  ;;  %p209_p1 = scmp.eq.s32.totalorder %s3895_s4, 0 }
  0x24   : > { %4976 = sst [smem:[#allocation32_spill]] %s3879_s3  ;;  %p214_p2 = scmp.ne.s32.totalorder %s3871_s2, %s3867_s24 }
  0x25   : > { %4977 = sst [smem:[#allocation33_spill]] %s3883_s26  ;;  %p4918_p3 = scmp.eq.s32.totalorder %s4082_s29, 0 }
  0x26   : > { %4978 = sst [smem:[#allocation34_spill]] %s3887_s27  ;;  %p4092_p4 = por %p209_p1, %p208_p0 }
  0x27   : > { %4979 = sst [smem:[#allocation35_spill]] %s3891_s28  ;;  %p555_p5 = scmp.ne.s32.totalorder %s3863_s23, %s3859_s22 }
  0x28   : > { %4980 = sst [smem:[#allocation36_spill]] %s3895_s4  ;;  %p4100_p6 = por %p4918_p3, %p214_p2 }
  0x29   : > { %4981 = sst [smem:[#allocation37_spill]] %s4082_s29  ;;  %p556_p7 = scmp.eq.s32.totalorder %s4082_s29, 3 }
  0x2a   : > { %s4983_s18 = scalar_select %p4100_p6, 1, 0 }
  0x2b   : > { %p561_p8 = scmp.ne.s32.totalorder %s3859_s22, %s3855_s1  ;;  %p562_p9 = scmp.eq.s32.totalorder %s2651_s30, 3 }
  0x2c   : > { %4984 = sst [smem:[#allocation38_spill]] %s4983_s18  ;;  %p4107_p10 = por %p556_p7, %p555_p5 }
  0x2d   : > { %p2652_p11 = scmp.ge.s32.totalorder %s3895_s4, 1  ;;  %p4112_p12 = por %p562_p9, %p561_p8 }
  0x2e   : > { %s4985_s24 = scalar_select %p4107_p10, 1, 0 }
  0x2f   : > { %s4987_s21 = scalar_select %p4112_p12, 1, 0 }
  0x30   : > { %4986 = sst [smem:[#allocation39_spill]] %s4985_s24  ;;  %p569_p13 = scmp.lt.s32.totalorder %s3895_s4, 5 }
  0x31   : > { %4988 = sst [smem:[#allocation40_spill]] %s4987_s21  ;;  %s3897_s5 = smov [#allocation3]  }
  0x32   : > { %p4117_p0 = pnand %p2652_p11, %p569_p13  ;;  %s582_s10 = sshll.u32 %s3897_s5, 4  ;;  %s583_s10 = int_to_ptr.vmem [resolvable:$true] %s582_s10 }
  0x33   : > { %p3132_p2 = scmp.lt.s32.totalorder %s3895_s4, 4  ;;  %s4993_s3 = sld [smem:[#allocation47_spill]] }
  0x34   : > { %s4989_s0 = scalar_select %p4117_p0, 1, 0 }
  0x35   : > { %p3079_p1 = pneg %p4117_p0  ;;  %p4132_p7 = pnand %p3132_p2, %p4092_p4 }
  0x36   : > { %4990 = sst [smem:[#allocation41_spill]] %s4989_s0 }
  0x37   : > { %p4126_p5 = pnand %p3079_p1, %p4918_p3 }
  0x38   : > { %s4992_s21 = scalar_select %p4132_p7, 1, 0 }
  0x39   : > { %s4991_s30 = scalar_select %p4126_p5, 1, 0 }
  0x3a   : > { %s4994_s18 = smov %s4993_s3  ;;  %s3347_s26 = scalar_lea.hbm %s4993_s3, 16 }
  0x3b   : > { %p3348_p8 = scmp.ne.s32.totalorder %s4994_s18, %s3347_s26  ;;  %p4144_p9 = pneg %p4126_p5 }
  0x3c   : > { %p3354_p13 = scmp.lt.u32.totalorder %s3347_s26, %s4994_s18 }
  0x3d   : > { %s4995_s2 = scalar_select %p4144_p9, 1, 0 }
  0x3e   : > { %p3350_p11 = pnand %p4144_p9, %p3348_p8 }
  0x40   : > { %p3351_p4 = pneg %p3350_p11 }
  0x42   : > { %p3356_p1 = pnand %p3354_p13, %p3351_p4 }
  0x44   : > { %3359 = shalt.err (!%p3356_p1)
}
  0x45   : > { %s3360_s1 = scalar_lea.vmem %s583_s10, 16  ;;  %s3367_s22 = scalar_lea.vmem %s583_s10, 32 }
  0x46   : > { %p3361_p2 = scmp.ne.s32.totalorder %s583_s10, %s3360_s1  ;;  %p3368_p10 = scmp.lt.s32.totalorder %s583_s10, %s583_s10 }
  0x47   : > { %p3369_p6 = scmp.lt.s32.totalorder %s3367_s22, %s3360_s1 }
  0x48   : > { %p3363_p3 = pnand %p3361_p2, %p4144_p9 }
  0x49   : > { %p3370_p0 = por %p3369_p6, %p3368_p10 }
  0x4a   : > { %p3364_p12 = pneg %p3363_p3 }
  0x4c   : > { %p3371_p7 = pnand %p3370_p0, %p3364_p12 }
  0x4e   : > { %3374 = shalt.err (!%p3371_p7)
}
  0x4f   : > { %3082 = dma.hbm_to_vmem [thread:$0]  (!%p4126_p5), %s4994_s18, 16, %s583_s10, [#allocation4]  }
  0x50   : > { %s45_s26 = sadd.s32 1, %s3887_s27  ;;  %s48_s29 = sadd.s32 1, %s3891_s28 }
  0x51   : > { %p46_p3 = scmp.ge.s32.totalorder %s45_s26, 2  ;;  %s670_s5 = sand.u32 1, %s3895_s4  }
  0x52   : > { %s4164_s20 = sand.u32 1, %s3875_s25   ;;  %s2769_s3 = sshll.u32 %s3887_s27, 10 }
  0x53   : > { %s5084_s26 = smov (%p46_p3, %s45_s26), 0  ;;  %s5086_s29 = smov (!%p46_p3, %s48_s29), %s3891_s28 }
  0x54   : > { %4996 = sst [smem:[#allocation42_spill]] %s5084_s26  ;;  %s198_s1 = ssub.s32 %s3887_s27, %s5084_s26 }
  0x55   : > { %s2659_s22 = sshll.u32 %s4164_s20, 6  ;;  %p50_p6 = scmp.ge.s32.totalorder %s5086_s29, 2 }
  0x56   : > { %p199_p10 = scmp.eq.s32.totalorder %s198_s1, 0  ;;  %s4998_s10 = sadd.s32 1, %s3875_s25 }
  0x57   : > { %s5088_s29 = smov (%p50_p6, %s5086_s29), 0  ;;  %s5000_s6 = sld [smem:[#allocation51_spill]] }
  0x58   : > { %4997 = sst [smem:[#allocation43_spill]] %s5088_s29  ;;  %s542_s18 = ssub.s32 %s3891_s28, %s5088_s29 }
  0x59   : > { %s4178_s24 = scalar_select %p199_p10, %s3875_s25, %s4998_s10  }
  0x5a   : > { %p543_p12 = scmp.eq.s32.totalorder %s542_s18, 0  ;;  %s674_s26 = scalar_lea.vmem [#allocation8], %s2659_s22 }
  0x5b   : > { %4999 = sst [smem:[#allocation44_spill]] %s4178_s24  ;;  %s681_s1 = sshll.u32 %s674_s26, 4  ;;  %s4187_s1 = int_to_ptr.vmem [resolvable:$true] %s681_s1 }
  0x5c   : > { %s5001_s15 = sadd.s32 1, %s3863_s23  ;;  %s4194_s10 = scalar_lea.sflag [#allocation4], %s670_s5 }
  0x5d   : > { %s4185_s19 = scalar_lea.hbm %s5000_s6, %s2769_s3  ;;  %p5002_p7 = scmp.ne.s32.totalorder %s4992_s21, 0 }
  0x5e   : > { %s4192_s16 = scalar_select %p543_p12, %s3863_s23, %s5001_s15  }
  0x5f   : > { %s3375_s29 = scalar_lea.hbm %s4185_s19, 1024  ;;  %p4200_p8 = pneg %p5002_p7 }
  0x60   : > { %p3376_p0 = scmp.ne.s32.totalorder %s4185_s19, %s3375_s29  ;;  %s3380_s26 = scalar_lea.hbm %s5000_s6, 2048 }
  0x61   : > { %s5003_s4 = scalar_select %p4200_p8, 1, 0 }
  0x62   : > { %p3378_p11 = pnand %p4200_p8, %p3376_p0  ;;  %p3381_p13 = scmp.lt.u32.totalorder %s4185_s19, %s5000_s6 }
  0x63   : > { %p3382_p1 = scmp.lt.u32.totalorder %s3380_s26, %s3375_s29  ;;  %p3384_p3 = scmp.lt.u32.totalorder %s3375_s29, %s4185_s19 }
  0x64   : > { %p3379_p4 = pneg %p3378_p11 }
  0x65   : > { %p3383_p2 = por %p3382_p1, %p3381_p13 }
  0x67   : > { %p3385_p6 = por %p3384_p3, %p3383_p2 }
  0x69   : > { %p3386_p10 = pnand %p3385_p6, %p3379_p4 }
  0x6b   : > { %3389 = shalt.err (!%p3386_p10)
}
  0x6c   : > { %s3390_s5 = scalar_lea.vmem %s4187_s1, 1024  ;;  %s3898_s3 = smov [#allocation8]  }
  0x6d   : > { %p3391_p12 = scmp.ne.s32.totalorder %s4187_s1, %s3390_s5  ;;  %s3395_s18 = sshll.u32 %s3898_s3, 4  ;;  %s3396_s18 = int_to_ptr.vmem [resolvable:$false] %s3395_s18 }
  0x6e   : > { %s3397_s0 = scalar_lea.vmem %s3396_s18, 2048  ;;  %p3398_p5 = scmp.lt.s32.totalorder %s4187_s1, %s3396_s18 }
  0x6f   : > { %p3393_p0 = pnand %p3391_p12, %p4200_p8  ;;  %p3399_p9 = scmp.lt.s32.totalorder %s3397_s0, %s3390_s5 }
  0x71   : > { %p3394_p11 = pneg %p3393_p0  ;;  %p3400_p13 = por %p3399_p9, %p3398_p5 }
  0x73   : > { %p3401_p1 = pnand %p3400_p13, %p3394_p11 }
  0x75   : > { %3404 = shalt.err (!%p3401_p1)
}
  0x76   : > { %s4939_s29 = smov 64   ;;  %s4940_s26 = smov 4  }
  0x77   : > { %3098 = dma.hbm_to_vmem [thread:$0]  (!%p5002_p7), %s4185_s19, 1024, %s4187_s1, %s4194_s10, %s4939_s29, %s4939_s29, %s4940_s26  }
  0x78   : > { %s4228_s22 = sshll.u32 %s3887_s27, 4  ;;  %s694_s15 = scalar_lea.vmem [#allocation9], %s4164_s20 }
  0x79   : > { %s701_s5 = sshll.u32 %s694_s15, 4  ;;  %s5004_s7 = sld [smem:[#allocation52_spill]]  ;;  %s702_s5 = int_to_ptr.vmem [resolvable:$true] %s701_s5 }
  0x7f   : > { %s699_s0 = scalar_lea.hbm %s5004_s7, %s4228_s22  ;;  %s3410_s25 = scalar_lea.hbm %s5004_s7, 32 }
  0x80   : > { %s3405_s6 = scalar_lea.hbm %s699_s0, 16  ;;  %p3411_p2 = scmp.lt.u32.totalorder %s699_s0, %s5004_s7 }
  0x81   : > { %p3406_p5 = scmp.ne.s32.totalorder %s699_s0, %s3405_s6  ;;  %p3412_p3 = scmp.lt.u32.totalorder %s3410_s25, %s3405_s6 }
  0x82   : > { %p3414_p10 = scmp.lt.u32.totalorder %s3405_s6, %s699_s0 }
  0x83   : > { %p3408_p9 = pnand %p3406_p5, %p4200_p8  ;;  %p3413_p6 = por %p3412_p3, %p3411_p2 }
  0x85   : > { %p3409_p4 = pneg %p3408_p9  ;;  %p3415_p12 = por %p3414_p10, %p3413_p6 }
  0x87   : > { %p3416_p0 = pnand %p3415_p12, %p3409_p4 }
  0x89   : > { %3419 = shalt.err (!%p3416_p0)
}
  0x8a   : > { %s3420_s15 = scalar_lea.vmem %s702_s5, 16  ;;  %s3901_s3 = smov [#allocation9]  }
  0x8b   : > { %p3421_p11 = scmp.ne.s32.totalorder %s702_s5, %s3420_s15  ;;  %s3425_s18 = sshll.u32 %s3901_s3, 4  ;;  %s3426_s18 = int_to_ptr.vmem [resolvable:$false] %s3425_s18 }
  0x8c   : > { %s3427_s28 = scalar_lea.vmem %s3426_s18, 32  ;;  %p3428_p5 = scmp.lt.s32.totalorder %s702_s5, %s3426_s18 }
  0x8d   : > { %p3423_p13 = pnand %p3421_p11, %p4200_p8  ;;  %p3429_p9 = scmp.lt.s32.totalorder %s3427_s28, %s3420_s15 }
  0x8f   : > { %p3424_p1 = pneg %p3423_p13  ;;  %p3430_p7 = por %p3429_p9, %p3428_p5 }
  0x91   : > { %p3431_p2 = pnand %p3430_p7, %p3424_p1 }
  0x93   : > { %3434 = shalt.err (!%p3431_p2)
}
  0x94   : > { %p5005_p3 = scmp.ne.s32.totalorder %s4992_s21, 0  ;;  %s5006_s8 = sld [smem:[#allocation53_spill]] }
  0x95   : > { %s711_s19 = scalar_lea.vmem [#allocation10], %s4164_s20  ;;  %s5007_s9 = sld [smem:[#allocation54_spill]] }
  0x96   : > { %3101 = dma.hbm_to_vmem [thread:$0]  (!%p5005_p3), %s699_s0, 16, %s702_s5, %s4194_s10  }
  0x97   : > { %s718_s1 = sshll.u32 %s711_s19, 4  ;;  %s719_s1 = int_to_ptr.vmem [resolvable:$true] %s718_s1 }
  0x9a   : > { %s4252_s24 = scalar_lea.hbm %s5006_s8, %s4228_s22  ;;  %s3440_s6 = scalar_lea.hbm %s5006_s8, 32 }
  0x9b   : > { %s4259_s18 = scalar_lea.hbm %s5007_s9, %s4228_s22  ;;  %s3435_s28 = scalar_lea.hbm %s4252_s24, 16 }
  0x9c   : > { %p3436_p7 = scmp.ne.s32.totalorder %s4252_s24, %s3435_s28  ;;  %p3441_p10 = scmp.lt.u32.totalorder %s4252_s24, %s5006_s8 }
  0x9d   : > { %p3442_p12 = scmp.lt.u32.totalorder %s3440_s6, %s3435_s28  ;;  %p3444_p11 = scmp.lt.u32.totalorder %s3435_s28, %s4252_s24 }
  0x9e   : > { %p3438_p4 = pnand %p3436_p7, %p4200_p8 }
  0x9f   : > { %p3443_p0 = por %p3442_p12, %p3441_p10 }
  0xa0   : > { %p3439_p6 = pneg %p3438_p4 }
  0xa1   : > { %p3445_p13 = por %p3444_p11, %p3443_p0 }
  0xa3   : > { %p3446_p1 = pnand %p3445_p13, %p3439_p6 }
  0xa5   : > { %3449 = shalt.err (!%p3446_p1)
}
  0xa6   : > { %s3450_s19 = scalar_lea.vmem %s719_s1, 16  ;;  %s3902_s15 = smov [#allocation10]  }
  0xa7   : > { %p3451_p5 = scmp.ne.s32.totalorder %s719_s1, %s3450_s19  ;;  %s3455_s3 = sshll.u32 %s3902_s15, 4  ;;  %s3456_s3 = int_to_ptr.vmem [resolvable:$false] %s3455_s3 }
  0xa8   : > { %s3457_s5 = scalar_lea.vmem %s3456_s3, 32  ;;  %p3458_p7 = scmp.lt.s32.totalorder %s719_s1, %s3456_s3 }
  0xa9   : > { %p3453_p9 = pnand %p3451_p5, %p4200_p8  ;;  %p3459_p4 = scmp.lt.s32.totalorder %s3457_s5, %s3450_s19 }
  0xab   : > { %p3454_p2 = pneg %p3453_p9  ;;  %p3460_p3 = por %p3459_p4, %p3458_p7 }
  0xad   : > { %p3461_p10 = pnand %p3460_p3, %p3454_p2 }
  0xaf   : > { %3464 = shalt.err (!%p3461_p10)
}
  0xb0   : > { %p5008_p12 = scmp.ne.s32.totalorder %s4992_s21, 0  ;;  %s728_s29 = scalar_lea.vmem [#allocation11], %s4164_s20 }
  0xb1   : > { %s735_s28 = sshll.u32 %s728_s29, 4  ;;  %s2665_s0 = sshll.u32 %s4164_s20, 1  ;;  %s736_s28 = int_to_ptr.vmem [resolvable:$true] %s735_s28 }
  0xb2   : > { %3104 = dma.hbm_to_vmem [thread:$0]  (!%p5008_p12), %s4252_s24, 16, %s719_s1, %s4194_s10  }
  0xb3   : > { %s3465_s6 = scalar_lea.hbm %s4259_s18, 16  ;;  %s3470_s15 = scalar_lea.hbm %s5007_s9, 32 }
  0xb4   : > { %p3466_p6 = scmp.ne.s32.totalorder %s4259_s18, %s3465_s6  ;;  %p3471_p11 = scmp.lt.u32.totalorder %s4259_s18, %s5007_s9 }
  0xb5   : > { %p3472_p13 = scmp.lt.u32.totalorder %s3470_s15, %s3465_s6  ;;  %p3474_p5 = scmp.lt.u32.totalorder %s3465_s6, %s4259_s18 }
  0xb6   : > { %p3468_p3 = pnand %p3466_p6, %p4200_p8 }
  0xb7   : > { %p3473_p1 = por %p3472_p13, %p3471_p11 }
  0xb8   : > { %p3469_p0 = pneg %p3468_p3 }
  0xb9   : > { %p3475_p9 = por %p3474_p5, %p3473_p1 }
  0xbb   : > { %p3476_p2 = pnand %p3475_p9, %p3469_p0 }
  0xbd   : > { %3479 = shalt.err (!%p3476_p2)
}
  0xbe   : > { %s3480_s24 = scalar_lea.vmem %s736_s28, 16  ;;  %s3903_s1 = smov [#allocation11]  }
  0xbf   : > { %p3481_p7 = scmp.ne.s32.totalorder %s736_s28, %s3480_s24  ;;  %s3485_s29 = sshll.u32 %s3903_s1, 4  ;;  %s3486_s29 = int_to_ptr.vmem [resolvable:$false] %s3485_s29 }
  0xc0   : > { %s3487_s25 = scalar_lea.vmem %s3486_s29, 32  ;;  %p3488_p6 = scmp.lt.s32.totalorder %s736_s28, %s3486_s29 }
  0xc1   : > { %p3483_p4 = pnand %p3481_p7, %p4200_p8  ;;  %p3489_p3 = scmp.lt.s32.totalorder %s3487_s25, %s3480_s24 }
  0xc3   : > { %p3484_p10 = pneg %p3483_p4  ;;  %p3490_p12 = por %p3489_p3, %p3488_p6 }
  0xc5   : > { %p3491_p11 = pnand %p3490_p12, %p3484_p10 }
  0xc7   : > { %3494 = shalt.err (!%p3491_p11)
}
  0xc8   : > { %p5009_p13 = scmp.ne.s32.totalorder %s4992_s21, 0  ;;  %s2770_s6 = sshll.u32 %s3887_s27, 5 }
  0xc9   : > { %s754_s19 = scalar_lea.vmem [#allocation12], %s2665_s0  ;;  %s5010_s11 = sld [smem:[#allocation56_spill]] }
  0xca   : > { %3107 = dma.hbm_to_vmem [thread:$0]  (!%p5009_p13), %s4259_s18, 16, %s736_s28, %s4194_s10  }
  0xcb   : > { %s762_s15 = sshll.u32 %s754_s19, 4  ;;  %s763_s15 = int_to_ptr.vmem [resolvable:$true] %s762_s15 }
  0xcf   : > { %s760_s1 = scalar_lea.hbm %s5010_s11, %s2770_s6  ;;  %s3500_s26 = scalar_lea.hbm %s5010_s11, 64 }
  0xd0   : > { %s3495_s24 = scalar_lea.hbm %s760_s1, 32  ;;  %p3501_p5 = scmp.lt.u32.totalorder %s760_s1, %s5010_s11 }
  0xd1   : > { %p3496_p12 = scmp.ne.s32.totalorder %s760_s1, %s3495_s24  ;;  %p3502_p9 = scmp.lt.u32.totalorder %s3500_s26, %s3495_s24 }
  0xd2   : > { %p3504_p7 = scmp.lt.u32.totalorder %s3495_s24, %s760_s1 }
  0xd3   : > { %p3498_p0 = pnand %p3496_p12, %p4200_p8  ;;  %p3503_p2 = por %p3502_p9, %p3501_p5 }
  0xd5   : > { %p3499_p1 = pneg %p3498_p0  ;;  %p3505_p4 = por %p3504_p7, %p3503_p2 }
  0xd7   : > { %p3506_p10 = pnand %p3505_p4, %p3499_p1 }
  0xd9   : > { %3509 = shalt.err (!%p3506_p10)
}
  0xda   : > { %s3510_s28 = scalar_lea.vmem %s763_s15, 32  ;;  %s3904_s0 = smov [#allocation12]  }
  0xdb   : > { %p3511_p6 = scmp.ne.s32.totalorder %s763_s15, %s3510_s28  ;;  %s3515_s6 = sshll.u32 %s3904_s0, 4  ;;  %s3516_s6 = int_to_ptr.vmem [resolvable:$false] %s3515_s6 }
  0xdc   : > { %s3517_s19 = scalar_lea.vmem %s3516_s6, 64  ;;  %p3518_p12 = scmp.lt.s32.totalorder %s763_s15, %s3516_s6 }
  0xdd   : > { %p3513_p3 = pnand %p3511_p6, %p4200_p8  ;;  %p3519_p0 = scmp.lt.s32.totalorder %s3517_s19, %s3510_s28 }
  0xdf   : > { %p3514_p11 = pneg %p3513_p3  ;;  %p3520_p13 = por %p3519_p0, %p3518_p12 }
  0xe1   : > { %p3521_p5 = pnand %p3520_p13, %p3514_p11 }
  0xe3   : > { %3524 = shalt.err (!%p3521_p5)
}
  0xe4   : > { %p5011_p9 = scmp.ne.s32.totalorder %s4992_s21, 0  ;;  %s2668_s7 = sshll.u32 %s4164_s20, 7 }
  0xe5   : > { %s2771_s26 = sshll.u32 %s3887_s27, 11  ;;  %s5012_s12 = sld [smem:[#allocation57_spill]] }
  0xe6   : > { %3110 = dma.hbm_to_vmem [thread:$0]  (!%p5011_p9), %s760_s1, 32, %s763_s15, %s4194_s10  }
  0xe7   : > { %s773_s29 = scalar_lea.vmem [#allocation13], %s2668_s7  ;;  %s5013_s13 = sld [smem:[#allocation58_spill]] }
  0xe8   : > { %s780_s25 = sshll.u32 %s773_s29, 4  ;;  %s4325_s25 = int_to_ptr.vmem [resolvable:$true] %s780_s25 }
  0xeb   : > { %s4323_s24 = scalar_lea.hbm %s5012_s12, %s2771_s26  ;;  %s3530_s19 = scalar_lea.hbm %s5012_s12, 4096 }
  0xec   : > { %s3525_s15 = scalar_lea.hbm %s4323_s24, 2048  ;;  %p3531_p7 = scmp.lt.u32.totalorder %s4323_s24, %s5012_s12 }
  0xed   : > { %s4331_s0 = scalar_lea.hbm %s5013_s13, %s4228_s22  ;;  %p3526_p13 = scmp.ne.s32.totalorder %s4323_s24, %s3525_s15 }
  0xee   : > { %p3532_p4 = scmp.lt.u32.totalorder %s3530_s19, %s3525_s15  ;;  %p3534_p6 = scmp.lt.u32.totalorder %s3525_s15, %s4323_s24 }
  0xef   : > { %p3528_p1 = pnand %p3526_p13, %p4200_p8 }
  0xf0   : > { %p3533_p10 = por %p3532_p4, %p3531_p7 }
  0xf1   : > { %p3529_p2 = pneg %p3528_p1 }
  0xf2   : > { %p3535_p3 = por %p3534_p6, %p3533_p10 }
  0xf4   : > { %p3536_p11 = pnand %p3535_p3, %p3529_p2 }
  0xf6   : > { %3539 = shalt.err (!%p3536_p11)
}
  0xf7   : > { %s3540_s7 = scalar_lea.vmem %s4325_s25, 2048  ;;  %s3905_s5 = smov [#allocation13]  }
  0xf8   : > { %p3541_p12 = scmp.ne.s32.totalorder %s4325_s25, %s3540_s7  ;;  %s3545_s29 = sshll.u32 %s3905_s5, 4  ;;  %s3546_s29 = int_to_ptr.vmem [resolvable:$false] %s3545_s29 }
  0xf9   : > { %s3547_s18 = scalar_lea.vmem %s3546_s29, 4096  ;;  %p3548_p13 = scmp.lt.s32.totalorder %s4325_s25, %s3546_s29 }
  0xfa   : > { %p3543_p0 = pnand %p3541_p12, %p4200_p8  ;;  %p3549_p1 = scmp.lt.s32.totalorder %s3547_s18, %s3540_s7 }
  0xfc   : > { %p3544_p5 = pneg %p3543_p0  ;;  %p3550_p7 = por %p3549_p1, %p3548_p13 }
  0xfe   : > { %p3551_p4 = pnand %p3550_p7, %p3544_p5 }
 0x100   : > { %3554 = shalt.err (!%p3551_p4)
}
 0x101   : > { %s5014_s28 = smov 4   ;;  %s5015_s15 = smov 64  }
 0x102   : > { %3113 = dma.hbm_to_vmem [thread:$0]  (!%p5011_p9), %s4323_s24, 2048, %s4325_s25, %s4194_s10, %s5015_s15, %s5015_s15, %s5014_s28  }
 0x103   : > { %s793_s1 = scalar_lea.vmem [#allocation14], %s4164_s20  ;;  %s3906_s19 = smov [#allocation6]  }
 0x104   : > { %s800_s6 = sshll.u32 %s793_s1, 4  ;;  %s593_s26 = sshll.u32 %s3906_s19, 4  ;;  %s4359_s6 = int_to_ptr.vmem [resolvable:$true] %s800_s6  ;;  %s594_s26 = int_to_ptr.vmem [resolvable:$true] %s593_s26 }
 0x105   : > { %s3555_s3 = scalar_lea.hbm %s4331_s0, 16  ;;  %s3560_s29 = scalar_lea.hbm %s5013_s13, 32 }
 0x106   : > { %p3556_p2 = scmp.ne.s32.totalorder %s4331_s0, %s3555_s3  ;;  %p3561_p3 = scmp.lt.u32.totalorder %s4331_s0, %s5013_s13 }
 0x107   : > { %p3562_p11 = scmp.lt.u32.totalorder %s3560_s29, %s3555_s3  ;;  %p3564_p0 = scmp.lt.u32.totalorder %s3555_s3, %s4331_s0 }
 0x108   : > { %p3558_p10 = pnand %p3556_p2, %p4200_p8 }
 0x109   : > { %p3563_p12 = por %p3562_p11, %p3561_p3 }
 0x10a   : > { %p3559_p6 = pneg %p3558_p10 }
 0x10b   : > { %p3565_p5 = por %p3564_p0, %p3563_p12 }
 0x10d   : > { %p3566_p13 = pnand %p3565_p5, %p3559_p6 }
 0x10f   : > { %3569 = shalt.err (!%p3566_p13)
}
 0x110   : > { %s3570_s24 = scalar_lea.vmem %s4359_s6, 16  ;;  %s3907_s25 = smov [#allocation14]  }
 0x111   : > { %p3571_p1 = scmp.ne.s32.totalorder %s4359_s6, %s3570_s24  ;;  %s3575_s28 = sshll.u32 %s3907_s25, 4  ;;  %s3576_s28 = int_to_ptr.vmem [resolvable:$false] %s3575_s28 }
 0x112   : > { %s3577_s8 = scalar_lea.vmem %s3576_s28, 32  ;;  %p3578_p2 = scmp.lt.s32.totalorder %s4359_s6, %s3576_s28 }
 0x113   : > { %p3573_p7 = pnand %p3571_p1, %p4200_p8  ;;  %p3579_p10 = scmp.lt.s32.totalorder %s3577_s8, %s3570_s24 }
 0x115   : > { %p3574_p4 = pneg %p3573_p7  ;;  %p3580_p3 = por %p3579_p10, %p3578_p2 }
 0x117   : > { %p3581_p11 = pnand %p3580_p3, %p3574_p4 }
 0x119   : > { %3584 = shalt.err (!%p3581_p11)
}
 0x11a   : > { %3116 = dma.hbm_to_vmem [thread:$0]  (!%p5011_p9), %s4331_s0, 16, %s4359_s6, %s4194_s10  }
 0x11b   : > { %s5016_s19 = sld [smem:[#allocation48_spill]]  ;;  %p5017_p12 = scmp.ne.s32.totalorder %s4995_s2, 0 }
 0x121   : > { %s3585_s3 = scalar_lea.hbm %s5016_s19, 16 }
 0x122   : > { %p3586_p6 = scmp.ne.s32.totalorder %s5016_s19, %s3585_s3  ;;  %p3592_p13 = scmp.lt.u32.totalorder %s3585_s3, %s5016_s19 }
 0x124   : > { %p3588_p0 = pnand %p3586_p6, %p5017_p12 }
 0x126   : > { %p3589_p5 = pneg %p3588_p0 }
 0x128   : > { %p3594_p1 = pnand %p3592_p13, %p3589_p5 }
 0x12a   : > { %3597 = shalt.err (!%p3594_p1)
}
 0x12b   : > { %s3598_s24 = scalar_lea.vmem %s594_s26, 16  ;;  %s3605_s0 = scalar_lea.vmem %s594_s26, 32 }
 0x12c   : > { %p3599_p7 = scmp.ne.s32.totalorder %s594_s26, %s3598_s24  ;;  %p3606_p10 = scmp.lt.s32.totalorder %s594_s26, %s594_s26 }
 0x12d   : > { %p3607_p3 = scmp.lt.s32.totalorder %s3605_s0, %s3598_s24 }
 0x12e   : > { %p3601_p4 = pnand %p3599_p7, %p5017_p12 }
 0x12f   : > { %p3608_p11 = por %p3607_p3, %p3606_p10 }
 0x130   : > { %p3602_p2 = pneg %p3601_p4 }
 0x132   : > { %p3609_p9 = pnand %p3608_p11, %p3602_p2 }
 0x134   : > { %3612 = shalt.err (!%p3609_p9)
}
 0x135   : > { %p5018_p6 = scmp.ne.s32.totalorder %s4991_s30, 0  ;;  %s3908_s28 = smov [#allocation18]  }
 0x136   : > { %s617_s8 = sshll.u32 %s3908_s28, 4  ;;  %s5019_s14 = sld [smem:[#allocation59_spill]]  ;;  %s618_s8 = int_to_ptr.vmem [resolvable:$true] %s617_s8 }
 0x137   : > { %3085 = dma.hbm_to_vmem [thread:$0]  (!%p5018_p6), %s5016_s19, 16, %s594_s26, [#allocation7]  }
 0x138   : > { %s5020_s17 = sld [smem:[#allocation62_spill]] }
 0x13c   : > { %s4405_s3 = scalar_lea.hbm %s5019_s14, %s4228_s22 }
 0x13e   : > { %s3613_s29 = scalar_lea.hbm %s5020_s17, 16 }
 0x13f   : > { %p3614_p9 = scmp.ne.s32.totalorder %s5020_s17, %s3613_s29  ;;  %p3620_p13 = scmp.lt.u32.totalorder %s3613_s29, %s5020_s17 }
 0x141   : > { %p3616_p0 = pnand %p3614_p9, %p5017_p12 }
 0x143   : > { %p3617_p5 = pneg %p3616_p0 }
 0x145   : > { %p3622_p1 = pnand %p3620_p13, %p3617_p5 }
 0x147   : > { %3625 = shalt.err (!%p3622_p1)
}
 0x148   : > { %s3626_s6 = scalar_lea.vmem %s618_s8, 16  ;;  %s3633_s25 = scalar_lea.vmem %s618_s8, 32 }
 0x149   : > { %p3627_p7 = scmp.ne.s32.totalorder %s618_s8, %s3626_s6  ;;  %p3634_p10 = scmp.lt.s32.totalorder %s618_s8, %s618_s8 }
 0x14a   : > { %p3635_p3 = scmp.lt.s32.totalorder %s3633_s25, %s3626_s6 }
 0x14b   : > { %p3629_p4 = pnand %p3627_p7, %p5017_p12 }
 0x14c   : > { %p3636_p11 = por %p3635_p3, %p3634_p10 }
 0x14d   : > { %p3630_p2 = pneg %p3629_p4 }
 0x14f   : > { %p3637_p8 = pnand %p3636_p11, %p3630_p2 }
 0x151   : > { %3640 = shalt.err (!%p3637_p8)
}
 0x152   : > { %3091 = dma.hbm_to_vmem [thread:$0]  (!%p5018_p6), %s5020_s17, 16, %s618_s8, [#allocation19]  }
 0x153   : > { %s810_s1 = scalar_lea.vmem [#allocation15], %s4164_s20  ;;  %s3909_s5 = smov [#allocation17]  }
 0x154   : > { %s817_s7 = sshll.u32 %s810_s1, 4  ;;  %s603_s29 = sshll.u32 %s3909_s5, 4  ;;  %s4426_s7 = int_to_ptr.vmem [resolvable:$true] %s817_s7  ;;  %s604_s29 = int_to_ptr.vmem [resolvable:$true] %s603_s29 }
 0x155   : > { %s3641_s18 = scalar_lea.hbm %s4405_s3, 16  ;;  %p5021_p9 = scmp.ne.s32.totalorder %s5003_s4, 0 }
 0x156   : > { %p3642_p8 = scmp.ne.s32.totalorder %s4405_s3, %s3641_s18  ;;  %s3646_s0 = scalar_lea.hbm %s5019_s14, 32 }
 0x157   : > { %p3647_p13 = scmp.lt.u32.totalorder %s4405_s3, %s5019_s14  ;;  %p3648_p1 = scmp.lt.u32.totalorder %s3646_s0, %s3641_s18 }
 0x158   : > { %p3644_p0 = pnand %p3642_p8, %p5021_p9  ;;  %p3650_p4 = scmp.lt.u32.totalorder %s3641_s18, %s4405_s3 }
 0x159   : > { %p3649_p7 = por %p3648_p1, %p3647_p13 }
 0x15a   : > { %p3645_p5 = pneg %p3644_p0 }
 0x15b   : > { %p3651_p2 = por %p3650_p4, %p3649_p7 }
 0x15d   : > { %p3652_p10 = pnand %p3651_p2, %p3645_p5 }
 0x15f   : > { %3655 = shalt.err (!%p3652_p10)
}
 0x160   : > { %s3656_s8 = scalar_lea.vmem %s4426_s7, 16  ;;  %s3910_s28 = smov [#allocation15]  }
 0x161   : > { %p3657_p3 = scmp.ne.s32.totalorder %s4426_s7, %s3656_s8  ;;  %s3661_s15 = sshll.u32 %s3910_s28, 4  ;;  %s3662_s15 = int_to_ptr.vmem [resolvable:$false] %s3661_s15 }
 0x162   : > { %s3663_s1 = scalar_lea.vmem %s3662_s15, 32  ;;  %p3664_p0 = scmp.lt.s32.totalorder %s4426_s7, %s3662_s15 }
 0x163   : > { %p3659_p11 = pnand %p3657_p3, %p5021_p9  ;;  %p3665_p6 = scmp.lt.s32.totalorder %s3663_s1, %s3656_s8 }
 0x165   : > { %p3660_p8 = pneg %p3659_p11  ;;  %p3666_p13 = por %p3665_p6, %p3664_p0 }
 0x167   : > { %p3667_p1 = pnand %p3666_p13, %p3660_p8 }
 0x169   : > { %3670 = shalt.err (!%p3667_p1)
}
 0x16a   : > { %p5022_p5 = scmp.ne.s32.totalorder %s4992_s21, 0  ;;  %s5023_s24 = sld [smem:[#allocation61_spill]] }
 0x16c   : > { %3119 = dma.hbm_to_vmem [thread:$0]  (!%p5022_p5), %s4405_s3, 16, %s4426_s7, %s4194_s10  }
 0x170   : > { %s5024_s0 = smov %s5023_s24  ;;  %s3671_s26 = scalar_lea.hbm %s5023_s24, 2048 }
 0x171   : > { %p3672_p7 = scmp.ne.s32.totalorder %s5024_s0, %s3671_s26  ;;  %p3678_p2 = scmp.lt.u32.totalorder %s3671_s26, %s5024_s0 }
 0x173   : > { %p3674_p6 = pnand %p3672_p7, %p5017_p12 }
 0x175   : > { %p3675_p4 = pneg %p3674_p6 }
 0x177   : > { %p3680_p10 = pnand %p3678_p2, %p3675_p4 }
 0x179   : > { %3683 = shalt.err (!%p3680_p10)
}
 0x17a   : > { %s3684_s15 = scalar_lea.vmem %s604_s29, 2048  ;;  %p3692_p0 = scmp.lt.s32.totalorder %s604_s29, %s604_s29 }
 0x17b   : > { %p3685_p3 = scmp.ne.s32.totalorder %s604_s29, %s3684_s15  ;;  %p3693_p13 = scmp.lt.s32.totalorder %s3684_s15, %s3684_s15 }
 0x17d   : > { %p3687_p11 = pnand %p3685_p3, %p5017_p12  ;;  %p3694_p1 = por %p3693_p13, %p3692_p0 }
 0x17f   : > { %p3688_p8 = pneg %p3687_p11 }
 0x181   : > { %p3695_p5 = pnand %p3694_p1, %p3688_p8 }
 0x183   : > { %3698 = shalt.err (!%p3695_p5)
}
 0x184   : > { %s3911_s3 = smov 128   ;;  %s3912_s7 = smov 8  }
 0x185   : > { %p5025_p7 = scmp.ne.s32.totalorder %s4991_s30, 0  ;;  %s3913_s18 = smov [#allocation20]  }
 0x186   : > { %s631_s24 = sshll.u32 %s3913_s18, 4  ;;  %s5026_s25 = sld [smem:[#allocation60_spill]]  ;;  %s632_s24 = int_to_ptr.vmem [resolvable:$true] %s631_s24 }
 0x187   : > { %3088 = dma.hbm_to_vmem [thread:$0]  (!%p5025_p7), %s5024_s0, 2048, %s604_s29, [#allocation7], %s3911_s3, %s3911_s3, %s3912_s7  }
 0x188   : > { %s5028_s11 = sld [smem:[#allocation64_spill]] }
 0x18c   : > { %s5027_s8 = smov %s5026_s25  ;;  %s4472_s28 = scalar_lea.hbm %s5026_s25, %s4228_s22 }
 0x18e   : > { %s3699_s12 = scalar_lea.hbm %s5028_s11, 16 }
 0x18f   : > { %p3700_p5 = scmp.ne.s32.totalorder %s5028_s11, %s3699_s12  ;;  %p3706_p2 = scmp.lt.u32.totalorder %s3699_s12, %s5028_s11 }
 0x191   : > { %p3702_p6 = pnand %p3700_p5, %p5017_p12 }
 0x193   : > { %p3703_p4 = pneg %p3702_p6 }
 0x195   : > { %p3708_p10 = pnand %p3706_p2, %p3703_p4 }
 0x197   : > { %3711 = shalt.err (!%p3708_p10)
}
 0x198   : > { %s3712_s7 = scalar_lea.vmem %s632_s24, 16  ;;  %s3719_s9 = scalar_lea.vmem %s632_s24, 32 }
 0x199   : > { %p3713_p3 = scmp.ne.s32.totalorder %s632_s24, %s3712_s7  ;;  %p3720_p0 = scmp.lt.s32.totalorder %s632_s24, %s632_s24 }
 0x19a   : > { %p3721_p13 = scmp.lt.s32.totalorder %s3719_s9, %s3712_s7 }
 0x19b   : > { %p3715_p11 = pnand %p3713_p3, %p5017_p12 }
 0x19c   : > { %p3722_p1 = por %p3721_p13, %p3720_p0 }
 0x19d   : > { %p3716_p8 = pneg %p3715_p11 }
 0x19f   : > { %p3723_p9 = pnand %p3722_p1, %p3716_p8 }
 0x1a1   : > { %3726 = shalt.err (!%p3723_p9)
}
 0x1a2   : > { %3094 = dma.hbm_to_vmem [thread:$0]  (!%p5025_p7), %s5028_s11, 16, %s632_s24, [#allocation19]  }
 0x1a3   : > { %s827_s12 = scalar_lea.vmem [#allocation16], %s4164_s20  ;;  %s3727_s22 = scalar_lea.hbm %s4472_s28, 16 }
 0x1a4   : > { %s834_s2 = sshll.u32 %s827_s12, 4  ;;  %p3728_p12 = scmp.ne.s32.totalorder %s4472_s28, %s3727_s22  ;;  %s835_s2 = int_to_ptr.vmem [resolvable:$true] %s834_s2 }
 0x1a5   : > { %p5029_p5 = scmp.ne.s32.totalorder %s5003_s4, 0  ;;  %s3732_s5 = scalar_lea.hbm %s5027_s8, 32 }
 0x1a6   : > { %p3733_p4 = scmp.lt.u32.totalorder %s4472_s28, %s5027_s8  ;;  %p3734_p2 = scmp.lt.u32.totalorder %s3732_s5, %s3727_s22 }
 0x1a7   : > { %p3730_p6 = pnand %p3728_p12, %p5029_p5  ;;  %p3736_p3 = scmp.lt.u32.totalorder %s3727_s22, %s4472_s28 }
 0x1a8   : > { %p3735_p10 = por %p3734_p2, %p3733_p4 }
 0x1a9   : > { %p3731_p9 = pneg %p3730_p6 }
 0x1aa   : > { %p3737_p7 = por %p3736_p3, %p3735_p10 }
 0x1ac   : > { %p3738_p11 = pnand %p3737_p7, %p3731_p9 }
 0x1ae   : > { %3741 = shalt.err (!%p3738_p11)
}
 0x1af   : > { %s3742_s20 = scalar_lea.vmem %s835_s2, 16  ;;  %s3914_s24 = smov [#allocation16]  }
 0x1b0   : > { %p3743_p8 = scmp.ne.s32.totalorder %s835_s2, %s3742_s20  ;;  %s3747_s6 = sshll.u32 %s3914_s24, 4  ;;  %s3748_s6 = int_to_ptr.vmem [resolvable:$false] %s3747_s6 }
 0x1b1   : > { %s3749_s25 = scalar_lea.vmem %s3748_s6, 32  ;;  %p3750_p1 = scmp.lt.s32.totalorder %s835_s2, %s3748_s6 }
 0x1b2   : > { %p3745_p0 = pnand %p3743_p8, %p5029_p5  ;;  %p3751_p12 = scmp.lt.s32.totalorder %s3749_s25, %s3742_s20 }
 0x1b4   : > { %p3746_p13 = pneg %p3745_p0  ;;  %p3752_p6 = por %p3751_p12, %p3750_p1 }
 0x1b6   : > { %p3753_p2 = pnand %p3752_p6, %p3746_p13 }
 0x1b8   : > { %3756 = shalt.err (!%p3753_p2)
}
 0x1b9   : > { %p5030_p4 = scmp.ne.s32.totalorder %s4992_s21, 0  ;;  %s5031_s15 = sld [smem:[#allocation41_spill]] }
 0x1bb   : > { %3122 = dma.hbm_to_vmem [thread:$0]  (!%p5030_p4), %s4472_s28, 16, %s835_s2, %s4194_s10  }
 0x1bf   : > { %p5032_p9 = scmp.ne.s32.totalorder %s5031_s15, 0 }
 0x1c0   : > { %s5033_s4 = sld [smem:[#allocation37_spill]] (!%p5032_p9) }
 0x1c1   : > { %843 = sbr.rel (%p5032_p9) target bundleno = 4124 (0x101c), region = 100 }
 0x1c6   : > { %p5034_p5 = scmp.eq.s32.totalorder (!%p5032_p9), %s5033_s4, 0 }
 0x1c8   : > { %3830 = dma.done.wait (%p5034_p5), [#allocation4], 16   ;;  %p5035_p10 = pmov %p5034_p5 }
 0x1c9   : > { %p5036_p3 = pmov %p5034_p5 }
 0x1ca   : > { %3832 = vsyncadd (%p5035_p10), [#allocation4], 4294967280 }
 0x1cb   : > { %3834 = dma.done.wait (%p5036_p3), [#allocation7], 16   ;;  %p5037_p7 = pmov %p5036_p3 }
 0x1cc   : > { %s5038_s21 = sld [smem:[#allocation30_spill]]  ;;  %s5039_s29 = sld [smem:[#allocation38_spill]] }
 0x1cd   : > { %3836 = vsyncadd (%p5037_p7), [#allocation7], 4294967280  ;;  %s853_s3 = sand.u32 1, %s5033_s4  }
 0x1ce   : > { %s854_s7 = scalar_lea.sflag [#allocation4], %s853_s3 }
 0x1d2   : > { %s4523_s10 = sand.u32 1, %s5038_s21   ;;  %p5040_p11 = scmp.ne.s32.totalorder %s5039_s29, 0 }
 0x1d3   : > { %s2677_s28 = sshll.u32 %s4523_s10, 6 }
 0x1d4   : > { %s4526_s9 = scalar_lea.vmem [#allocation8], %s2677_s28 }
 0x1d5   : > { %3838 = dma.done.wait (%p5040_p11), %s854_s7, 3200  }
 0x1d6   : > { %3840 = vsyncadd (%p5040_p11), %s854_s7, 4294964096  ;;  %s2678_s13 = sshll.u32 %s4523_s10, 1  ;;  %s2679_s14 = sshll.u32 %s4523_s10, 7 }
 0x1d7   : > { %s4537_s1 = scalar_lea.vmem [#allocation12], %s2678_s13  ;;  %s4539_s30 = scalar_lea.vmem [#allocation13], %s2679_s14 }
 0x1d8   : > { %p5041_p8 = pmov %p5036_p3 }
 0x1d9   : > { %p5042_p0 = pmov %p5036_p3 }
 0x1da   : > { %3842 = dma.done.wait (%p5041_p8), [#allocation7], 2048  }
 0x1db   : > { %3844 = vsyncadd (%p5042_p0), [#allocation7], 4294965248  ;;  %p5043_p13 = pmov %p5042_p0 }
 0x1dc   : > { %p5044_p1 = pmov %p5042_p0 }
 0x1dd   : > { %3846 = dma.done.wait (%p5043_p13), [#allocation19], 32  }
 0x1de   : > { %3848 = vsyncadd (%p5044_p1), [#allocation19], 4294967264  ;;  %s5045_s20 = sld [smem:[#allocation29_spill]]  ;;  %s5046_s24 = sld [smem:[#allocation33_spill]] }
 0x1df   : > { %s5047_s6 = sld [smem:[#allocation32_spill]]  ;;  %s5048_s28 = sld [smem:[#allocation46_spill]] }
 0x1e0   : > { %s5049_s14 = sld [smem:[#allocation45_spill]]  ;;  %s5050_s25 = sld [smem:[#allocation49_spill]] }
 0x1e1   : > { %s5051_s17 = sld [smem:[#allocation55_spill]]  ;;  %s5052_s3 = sld [smem:[#allocation50_spill]] }
 0x1e4   : > { %p1046_p12 = scmp.lt.s32.totalorder %s5046_s24, 1  ;;  %s5053_s7 = sand.u32 1, %s5045_s20  }
 0x1e5   : > { %p1053_p6 = scmp.lt.s32.totalorder %s5047_s6, 1  ;;  %p2687_p2 = scmp.ne.s32.totalorder %s5047_s6, 0 }
 0x1e6   : > { %s5090_s24 = smov (!%p1046_p12, %s5046_s24), 1  ;;  %v2688_v9 = vld [vmem:[#allocation3] ss:$0 sm:$0xff] (!%p2687_p2)  ;;  %v2689_v11 = vld [vmem:[#allocation6] ss:$0 sm:$0xff] (!%p2687_p2) }
 0x1e7   : > { %s1054_s15 = scalar_select %p1053_p6, %s5047_s6, 1 }
 0x1e8   : > { %s2683_s21 = sshll.u32 %s5090_s24, 3  ;;  %s1052_s4 = scalar_lea.vmem %s5048_s28, %s5090_s24 }
 0x1e9   : > { %s1049_s26 = scalar_lea.vmem %s5049_s14, %s2683_s21  ;;  %s3037_s18 = smul.u32 192, %s1054_s15 }
 0x1ea   : > { %s3038_s5 = smul.u32 3, %s1054_s15  ;;  %s2772_s22 = sshll.u32 %s1054_s15, 7  ;;  %v1072_v0 = vld [vmem:[%s1049_s26] sm:$0xff] (!%p2687_p2) }
 0x1eb   : > { %s4570_s0 = scalar_lea.vmem %s5050_s25, %s3037_s18  ;;  %s4575_s19 = scalar_lea.vmem %s5051_s17, %s2772_s22  ;;  %1075 = vadd.xlane.f32.xlu0 (!%p2687_p2), %v1072_v0 }
 0x1ec   : > { %s4580_s28 = scalar_lea.vmem %s5052_s3, %s3038_s5  ;;  %s4584_s21 = scalar_lea.vmem [#allocation21], %s5053_s7 }
 0x1ed   : > { %1071 = sbr.rel (%p2687_p2) target bundleno = 803 (0x323), region = 160 }
 0x278   : > { %v1076_v1 = vpop.xlane.xlu0 %1075 }
 0x279   : > { %v1078_v2 = vmul.f32 0.0078125, %v1076_v1 }
 0x27b   : > { %v1079_v3 = vsub.f32 %v1072_v0, %v1078_v2 }
 0x27d   : > { %v1080_v4 = vmul.f32 %v1079_v3, %v1079_v3 }
 0x27f   : > { %1081 = vadd.xlane.f32.xlu0 %v1080_v4 }
 0x30c   : > { %v1082_v5 = vpop.xlane.xlu0 %1081 }
 0x30d   : > { %v1083_v6 = vmul.f32 0.0078125, %v1082_v5 }
 0x30f   : > { %v1084_v7 = vadd.f32 1e-12, %v1083_v6 }
 0x311   : > { %3243 = vrsqrt.f32 %v1084_v7 }
 0x31b   : > { %v3244_v8 = vpop.eup %3243 }
 0x31c   : > { %v1086_v10 = vmul.f32 %v3244_v8, %v1079_v3 }
 0x31e   : > { %v1093_v12 = vmul.f32 %v2688_v9, %v1086_v10 }
 0x320   : > { %v1100_v13 = vadd.f32 %v2689_v11, %v1093_v12 }
 0x322   : > { %1101 = vst [vmem:[#allocation2] sm:$0xff] %v1100_v13 }
 0x323 PF: > { %v3245_v14 = vld [vmem:[%s4570_s0 + $0x4] ss:$12 sps:$4 sm:$0xff]   ;;  %v3247_v15 = vld [vmem:[%s4570_s0] ss:$12 sps:$4 sm:$0xff]   ;;  %v3915_v16 = vmov 0   ;;  %v3916_v17 = vmov 0.0   ;;  %v1138_v42 = vlaneseq }
 0x324   : > { %1313 = vmatprep.mubr.bf16.mxu0 %v3915_v16  ;;  %2855 = vmatprep.subr.bf16.mxu1 %v3916_v17  ;;  %v3248_v18 = vld [vmem:[%s4570_s0 + $0x1c] ss:$12 sps:$4 sm:$0xff]   ;;  %v3250_v19 = vld [vmem:[%s4570_s0 + $0x18] ss:$12 sps:$4 sm:$0xff]   ;;  %v3251_v20 = vld [vmem:[%s4570_s0 + $0x34] ss:$12 sps:$4 sm:$0xff]  }
 0x325   : > { %1281 = vmatprep.subr.bf16.mxu0 %v3245_v14  ;;  %v3253_v21 = vld [vmem:[%s4570_s0 + $0x30] ss:$12 sps:$4 sm:$0xff]   ;;  %v3254_v22 = vld [vmem:[%s4570_s0 + $0x4c] ss:$12 sps:$4 sm:$0xff]   ;;  %v3256_v23 = vld [vmem:[%s4570_s0 + $0x48] ss:$12 sps:$4 sm:$0xff]  }
 0x326   : > { %1282 = vmatpush1.bf16.msra.mxu0 %v3247_v15  ;;  %v3269_v24 = vld [vmem:[%s4570_s0 + $0x8] ss:$12 sps:$4 sm:$0xff]   ;;  %v3257_v25 = vld [vmem:[%s4570_s0 + $0x64] ss:$12 sps:$4 sm:$0xff]   ;;  %v3270_v26 = vld [vmem:[%s4570_s0 + $0x20] ss:$12 sps:$4 sm:$0xff]  }
 0x327   : > { %1283 = vmatprep.subr.bf16.mxu0 %v3248_v18  ;;  %2856 = vmatpush3.bf16.msra.mxu1 %v3269_v24  ;;  %v3259_v27 = vld [vmem:[%s4570_s0 + $0x60] ss:$12 sps:$4 sm:$0xff]   ;;  %v3260_v28 = vld [vmem:[%s4570_s0 + $0x7c] ss:$12 sps:$4 sm:$0xff]   ;;  %v3262_v29 = vld [vmem:[%s4570_s0 + $0x78] ss:$12 sps:$4 sm:$0xff]  }
 0x328   : > { %2857 = vmatprep.subr.bf16.mxu1 %v3916_v17  ;;  %v3271_v30 = vld [vmem:[%s4570_s0 + $0x38] ss:$12 sps:$4 sm:$0xff]   ;;  %v3263_v31 = vld [vmem:[%s4570_s0 + $0x94] ss:$12 sps:$4 sm:$0xff]   ;;  %v3272_v32 = vld [vmem:[%s4570_s0 + $0x50] ss:$12 sps:$4 sm:$0xff]  }
 0x329   : > { %v3265_v33 = vld [vmem:[%s4570_s0 + $0x90] ss:$12 sps:$4 sm:$0xff]   ;;  %v3266_v34 = vld [vmem:[%s4570_s0 + $0xac] ss:$12 sps:$4 sm:$0xff]   ;;  %v3273_v35 = vld [vmem:[%s4570_s0 + $0x68] ss:$12 sps:$4 sm:$0xff]  }
 0x32a   : > { %1284 = vmatpush1.bf16.msra.mxu0 %v3250_v19  ;;  %v3268_v36 = vld [vmem:[%s4570_s0 + $0xa8] ss:$12 sps:$4 sm:$0xff]   ;;  %v4613_v37 = vld [vmem:[#allocation2] sm:$0xff]  ;;  %v3276_v41 = vld [vmem:[%s4570_s0 + $0xb0] ss:$12 sps:$4 sm:$0xff]   ;;  %vm3917_vm0 = vmmov 0  }
 0x32b   : > { %1285 = vmatprep.subr.bf16.mxu0 %v3251_v20  ;;  %2858 = vmatpush3.bf16.msra.mxu1 %v3270_v26  ;;  %v3274_v38 = vld [vmem:[%s4570_s0 + $0x80] ss:$12 sps:$4 sm:$0xff]   ;;  %v1103_v39 = vpack.c.bf16 %v4613_v37, %v4613_v37  ;;  %v3275_v40 = vld [vmem:[%s4570_s0 + $0x98] ss:$12 sps:$4 sm:$0xff]   ;;  %v4632_v43 = vshrl.u32 %v1138_v42, 7  ;;  %vm1381_vm1 = vcmask 523264  }
 0x32c   : > { %2859 = vmatprep.subr.bf16.mxu1 %v3916_v17  ;;  %2871 = vmatprep.mubr.msk.bf16.mxu1 %vm3917_vm0, %v3916_v17  ;;  %v1136_v45 = vld [vmem:[%s4580_s28] sm:$0x7]  ;;  %s3918_s11 = smov 64   ;;  %vm1512_vm2 = vcmask 1043456   ;;  %vm1484_vm3 = vcmask 64512   ;;  %s5055_s8 = scalar_lea.vmem [#allocation9], %s4523_s10 }
 0x32d   : > { %v1144_v44 = vsub.s32 1, %v4632_v43  ;;  %v1140_v46 = vsub.s32 0, %v4632_v43  ;;  %v1148_v62 = vsub.s32 2, %v4632_v43  ;;  %v2716_v9 = vld [vmem:[%s1052_s4] ss:$0 sm:$0xff]  ;;  %s5057_s12 = scalar_lea.vmem [#allocation11], %s4523_s10 }
 0x32e   : > { %1286 = vmatpush1.bf16.msra.mxu0 %v3253_v21  ;;  %s5059_s2 = scalar_lea.vmem [#allocation15], %s4523_s10  ;;  %s5060_s22 = scalar_lea.vmem [#allocation16], %s4523_s10 }
 0x32f   : > { %1287 = vmatprep.subr.bf16.mxu0 %v3254_v22  ;;  %2860 = vmatpush3.bf16.msra.mxu1 %v3271_v30  ;;  %v1145_v47 = vrot.slane %v1136_v45, %v1144_v44  ;;  %v1141_v50 = vrot.slane %v1136_v45, %v1140_v46  ;;  %v1149_v63 = vrot.slane %v1136_v45, %v1148_v62 }
 0x330   : > { %2861 = vmatprep.subr.bf16.mxu1 %v3916_v17 }
 0x332   : > { %1288 = vmatpush1.bf16.msra.mxu0 %v3256_v23 }
 0x333   : > { %1289 = vmatprep.subr.bf16.mxu0 %v3257_v25  ;;  %2862 = vmatpush3.bf16.msra.mxu1 %v3272_v32 }
 0x334   : > { %2863 = vmatprep.subr.bf16.mxu1 %v3916_v17 }
 0x336   : > { %1290 = vmatpush1.bf16.msra.mxu0 %v3259_v27 }
 0x337   : > { %1291 = vmatprep.subr.bf16.mxu0 %v3260_v28  ;;  %2864 = vmatpush3.bf16.msra.mxu1 %v3273_v35 }
 0x338   : > { %2865 = vmatprep.subr.bf16.mxu1 %v3916_v17 }
 0x33a   : > { %1292 = vmatpush1.bf16.msra.mxu0 %v3262_v29 }
 0x33b   : > { %1293 = vmatprep.subr.bf16.mxu0 %v3263_v31  ;;  %2866 = vmatpush3.bf16.msra.mxu1 %v3274_v38 }
 0x33c   : > { %2867 = vmatprep.subr.bf16.mxu1 %v3916_v17 }
 0x33e   : > { %1294 = vmatpush1.bf16.msra.mxu0 %v3265_v33 }
 0x33f   : > { %1295 = vmatprep.subr.bf16.mxu0 %v3266_v34  ;;  %2868 = vmatpush3.bf16.msra.mxu1 %v3275_v40 }
 0x340   : > { %2869 = vmatprep.subr.bf16.mxu1 %v3916_v17 }
 0x342   : > { %1296 = vmatpush1.bf16.msra.mxu0 %v3268_v36 }
 0x343   : > { %2899 = vmatprep.subr.bf16.mxu0 %v3916_v17  ;;  %2870 = vmatpush3.bf16.msra.mxu1 %v3276_v41 }
 0x344   : > { %2875 = vmatprep.subr.bf16.mxu1 %v3916_v17 }
 0x345   : > { %1314 = vmatmul.mubr.bf16.vlgmr.msra.gmra.mrb[0].mxu0 %v1103_v39 }
 0x346   : > { %2915 = vmatprep.mubr.msk.bf16.mxu0 %vm3917_vm0, %v3916_v17  ;;  %2872 = vmatmul.mubr.bf16.vlgmr.msra.gmra.mrb[0].mxu1 %v1103_v39 }
 0x347   : > { %2877 = vmatprep.mubr.msk.bf16.mxu1 %vm3917_vm0, %v3916_v17 }
 0x418   : > { %v1315_v48 = vpop.f32.mrb[0].mxu0 }
 0x419   : > { %v1317_v49 = vpop.f32.mrb[1].mxu0  ;;  %v1316_v55 = vadd.f32 %v1315_v48, %v1141_v50  ;;  %v1356_v58 = vpop.f32.mrb[0].mxu1  ;;  %v3277_v50 = vld [vmem:[%s4526_s9] sm:$0xff]  }
 0x41a   : > { %v1318_v51 = vadd.f32 %v1317_v49, %v1145_v47  ;;  %v1319_v52 = vpop.f32.mrb[2].mxu0  ;;  %v2873_v59 = vpop.f32.mrb[1].mxu1  ;;  %v1357_v2 = vadd.f32 %v1356_v58, %v1149_v63  ;;  %2900 = vmatpush3.bf16.msra.mxu0 %v3277_v50  ;;  %v3282_v58 = vld [vmem:[%s4526_s9 + $0x28] sm:$0xff]   ;;  %v3314_v50 = vld [vmem:[%s4539_s30 + $0x10] sm:$0xff]  }
 0x41b   : > { %v1320_v53 = vpop.f32.mrb[3].mxu0  ;;  %v1366_v57 = vpack.c.bf16 %v1316_v55, %v1316_v55  ;;  %v1359_v60 = vpop.f32.mrb[2].mxu1  ;;  %2901 = vmatprep.subr.bf16.mxu0 %v3916_v17  ;;  %v3279_v52 = vld [vmem:[%s4526_s9 + $0x10] sm:$0xff]  }
 0x41c   : > { %v1372_v54 = vpack.c.bf16 %v1318_v51, %v1318_v51  ;;  %1369 = vrot.lane.b32.xlu0 %v1318_v51, %s3918_s11  ;;  %v2874_v61 = vpop.f32.mrb[3].mxu1  ;;  %v1378_v4 = vpack.c.bf16 %v1357_v2, %v1357_v2  ;;  %v3278_v51 = vld [vmem:[%s4526_s9 + $0x8] sm:$0xff]   ;;  %v3283_v59 = vld [vmem:[%s4526_s9 + $0x30] sm:$0xff]   ;;  %v3284_v60 = vld [vmem:[%s4526_s9 + $0x38] sm:$0xff]  }
 0x41e   : > { %v1386_v56 = vsel %vm1381_vm1, %v1372_v54, 0  ;;  %v1514_v7 = vsel %vm1512_vm2, %v1378_v4, 0  ;;  %2902 = vmatpush3.bf16.msra.mxu0 %v3278_v51  ;;  %v3280_v54 = vld [vmem:[%s4526_s9 + $0x18] sm:$0xff]   ;;  %v3315_v51 = vld [vmem:[%s4539_s30 + $0x58] sm:$0xff]  }
 0x41f   : > { %2876 = vmatpush3.bf16.xpose.msra.mxu1 %v1386_v56  ;;  %2903 = vmatprep.subr.bf16.mxu0 %v3916_v17 }
 0x420   : > { %1363 = vrot.lane.b32.xlu0 %v1316_v55, %s3918_s11  ;;  %2881 = vmatprep.subr.bf16.mxu1 %v3916_v17 }
 0x422   : > { %2904 = vmatpush3.bf16.msra.mxu0 %v3279_v52  ;;  %v3316_v52 = vld [vmem:[%s4539_s30 + $0x18] sm:$0xff]  }
 0x423   : > { %2905 = vmatprep.subr.bf16.mxu0 %v3916_v17 }
 0x426   : > { %2878 = vmatmul.mubr.msk.bf16.vlgmr.msra.gmra.mrb[4].mxu1 %vm1381_vm1, %v1366_v57  ;;  %2906 = vmatpush3.bf16.msra.mxu0 %v3280_v54  ;;  %v3281_v57 = vld [vmem:[%s4526_s9 + $0x20] sm:$0xff]   ;;  %s5056_s9 = scalar_lea.vmem [#allocation10], %s4523_s10  ;;  %v3318_v54 = vld [vmem:[%s4539_s30 + $0x20] sm:$0xff]  }
 0x427   : > { %2883 = vmatprep.mubr.msk.bf16.mxu1 %vm3917_vm0, %v3916_v17  ;;  %2907 = vmatprep.subr.bf16.mxu0 %v3916_v17 }
 0x42a   : > { %2908 = vmatpush3.bf16.msra.mxu0 %v3281_v57  ;;  %v3322_v57 = vld [vmem:[%s4539_s30 + $0x30] sm:$0xff]  }
 0x42b   : > { %2909 = vmatprep.subr.bf16.mxu0 %v3916_v17 }
 0x42e   : > { %2910 = vmatpush3.bf16.msra.mxu0 %v3282_v58  ;;  %v3323_v58 = vld [vmem:[%s4539_s30 + $0x78] sm:$0xff]  }
 0x42f   : > { %2911 = vmatprep.subr.bf16.mxu0 %v3916_v17 }
 0x432   : > { %2912 = vmatpush3.bf16.msra.mxu0 %v3283_v59  ;;  %v3324_v59 = vld [vmem:[%s4539_s30 + $0x38] sm:$0xff]  }
 0x433   : > { %2913 = vmatprep.subr.bf16.mxu0 %v3916_v17 }
 0x436   : > { %2914 = vmatpush3.bf16.msra.mxu0 %v3284_v60  ;;  %v1765_v60 = vld [vmem:[%s4537_s1] sm:$0x3]  ;;  %s5061_s1 = sld [smem:[#allocation32_spill]] }
 0x43c   : > { %p2765_p4 = scmp.ne.s32.totalorder %s5061_s1, 1 }
 0x43d   : > { %vm3920_vm4 = vmmov (!%p2765_p4), 0   ;;  %s5062_s5 = sld [smem:[#allocation63_spill]] (!%p2765_p4)  ;;  %vm2301_vm5 = vcmask (!%p2765_p4), 16384  }
 0x48e   : > { %v1370_v0 = vpop.permute.xlu0 %1369 }
 0x48f   : > { %v1373_v1 = vpack.c.bf16 %v1370_v0, %v1370_v0 }
 0x491   : > { %v1432_v3 = vsel %vm1381_vm1, %v1373_v1, 0 }
 0x492   : > { %2882 = vmatpush3.bf16.xpose.msra.mxu1 %v1432_v3  ;;  %v1364_v5 = vpop.permute.xlu0 %1363 }
 0x493   : > { %2887 = vmatprep.subr.bf16.mxu1 %v3916_v17  ;;  %v1367_v6 = vpack.c.bf16 %v1364_v5, %v1364_v5 }
 0x499   : > { %2884 = vmatmul.mubr.msk.bf16.vlgmr.msra.gmra.mrb[8].mxu1 %vm1381_vm1, %v1367_v6 }
 0x49a   : > { %2888 = vmatpush3.bf16.msra.mxu1 %v1514_v7  ;;  %2889 = vmatprep.mubr.msk.bf16.mxu1 %vm3917_vm0, %v3916_v17 }
 0x49b   : > { %2893 = vmatprep.subr.bf16.mxu1 %v3916_v17 }
 0x4f9   : > { %v1422_v8 = vpop.f32.mrb[4].mxu1 }
 0x4fa   : > { %v1474_v10 = vmul.f32 0.125, %v1422_v8  ;;  %v2879_v11 = vpop.f32.mrb[5].mxu1 }
 0x4fb   : > { %v1425_v12 = vpop.f32.mrb[6].mxu1  ;;  %v3287_v11 = vld [vmem:[%s4575_s19 + $0x4] ss:$8 sps:$4 sm:$0xff]  }
 0x4fc   : > { %v2880_v13 = vpop.f32.mrb[7].mxu1  ;;  %v1482_v14 = vadd.f32 %v2716_v9, %v1474_v10  ;;  %v3285_v10 = vld [vmem:[%s4575_s19] ss:$8 sps:$4 sm:$0xff]   ;;  %v3290_v12 = vld [vmem:[%s4575_s19 + $0x14] ss:$8 sps:$4 sm:$0xff]  }
 0x4fd   : > { %v3288_v13 = vld [vmem:[%s4575_s19 + $0x10] ss:$8 sps:$4 sm:$0xff]  }
 0x4fe   : > { %v1485_v15 = vsel %vm1484_vm3, %v1482_v14, -inf }
 0x4ff   : > { %1486 = vmax.xlane.f32.xlu1 %v1485_v15  ;;  %v3291_v15 = vld [vmem:[%s4575_s19 + $0x20] ss:$8 sps:$4 sm:$0xff]  }
 0x56c   : > { %v1468_v18 = vpop.f32.mrb[8].mxu1 }
 0x56d   : > { %v1475_v19 = vmul.f32 0.125, %v1468_v18  ;;  %v2885_v20 = vpop.f32.mrb[9].mxu1 }
 0x56e   : > { %v1471_v21 = vpop.f32.mrb[10].mxu1 }
 0x56f   : > { %v2886_v22 = vpop.f32.mrb[11].mxu1  ;;  %v1483_v23 = vadd.f32 %v2716_v9, %v1475_v19  ;;  %v3296_v21 = vld [vmem:[%s4575_s19 + $0x34] ss:$8 sps:$4 sm:$0xff]  }
 0x570   : > { %v3294_v22 = vld [vmem:[%s4575_s19 + $0x30] ss:$8 sps:$4 sm:$0xff]  }
 0x571   : > { %v1488_v24 = vsel %vm1484_vm3, %v1483_v23, -inf }
 0x572   : > { %1489 = vmax.xlane.f32.xlu1 %v1488_v24  ;;  %v3297_v24 = vld [vmem:[%s4575_s19 + $0x40] ss:$8 sps:$4 sm:$0xff]  }
 0x58c   : > { %v1487_v25 = vpop.xlane.xlu1 %1486 }
 0x58d   : > { %v1491_v26 = vsub.f32 %v1482_v14, %v1487_v25  ;;  %v3293_v14 = vld [vmem:[%s4575_s19 + $0x24] ss:$8 sps:$4 sm:$0xff]   ;;  %v3302_v25 = vld [vmem:[%s4575_s19 + $0x54] ss:$8 sps:$4 sm:$0xff]  }
 0x58f   : > { %v1493_v27 = vmul.f32 1.442695, %v1491_v26  ;;  %v3300_v26 = vld [vmem:[%s4575_s19 + $0x50] ss:$8 sps:$4 sm:$0xff]  }
 0x591   : > { %3325 = vpow2.f32 %v1493_v27  ;;  %v3305_v27 = vld [vmem:[%s4575_s19 + $0x64] ss:$8 sps:$4 sm:$0xff]  }
 0x59b   : > { %v3326_v28 = vpop.eup %3325 }
 0x59c   : > { %v1497_v29 = vsel %vm1484_vm3, %v3326_v28, 0.0 }
 0x59d   : > { %1498 = vadd.xlane.f32.xlu0 %v1497_v29  ;;  %v3308_v29 = vld [vmem:[%s4575_s19 + $0x74] ss:$8 sps:$4 sm:$0xff]  }
 0x5ff   : > { %v1490_v30 = vpop.xlane.xlu1 %1489 }
 0x600   : > { %v1492_v31 = vsub.f32 %v1483_v23, %v1490_v30  ;;  %v3299_v23 = vld [vmem:[%s4575_s19 + $0x44] ss:$8 sps:$4 sm:$0xff]   ;;  %v3306_v30 = vld [vmem:[%s4575_s19 + $0x70] ss:$8 sps:$4 sm:$0xff]  }
 0x602   : > { %v1495_v32 = vmul.f32 1.442695, %v1492_v31 }
 0x604   : > { %3327 = vpow2.f32 %v1495_v32 }
 0x60e   : > { %v3328_v33 = vpop.eup %3327 }
 0x60f   : > { %v1500_v34 = vsel %vm1484_vm3, %v3328_v33, 0.0 }
 0x610   : > { %1501 = vadd.xlane.f32.xlu1 %v1500_v34 }
 0x621   : > { %1375 = vrot.lane.b32.xlu1 %v1357_v2, %s3918_s11 }
 0x62a   : > { %v1499_v35 = vpop.xlane.xlu0 %1498 }
 0x62b   : > { %3329 = vrcp.f32 %v1499_v35  ;;  %v2728_v35 = vld [vmem:[%s5056_s9] ss:$0 sm:$0xff] }
 0x635   : > { %v3330_v36 = vpop.eup %3329 }
 0x636   : > { %v1505_v38 = vmul.f32 %v3330_v36, %v3326_v28  ;;  %v3303_v28 = vld [vmem:[%s4575_s19 + $0x60] ss:$8 sps:$4 sm:$0xff]   ;;  %s5058_s19 = scalar_lea.vmem [#allocation14], %s4523_s10 }
 0x638   : > { %v1507_v39 = vpack.c.bf16 %v1505_v38, %v1505_v38  ;;  %v2729_v38 = vld [vmem:[%s5057_s12] ss:$0 sm:$0xff] }
 0x63a   : > { %2890 = vmatmul.mubr.msk.bf16.vlgmr.msra.gmra.mrb[12].mxu1 %vm1484_vm3, %v1507_v39 }
 0x63b   : > { %2895 = vmatprep.mubr.msk.bf16.mxu1 %vm3917_vm0, %v3916_v17  ;;  %v2719_v17 = vld [vmem:[%s5055_s8] ss:$0 sm:$0xff] }
 0x69d   : > { %v1502_v40 = vpop.xlane.xlu1 %1501 }
 0x69e   : > { %3331 = vrcp.f32 %v1502_v40 }
 0x6a1   : > { %v1376_v41 = vpop.permute.xlu1 %1375 }
 0x6a2   : > { %v1379_v42 = vpack.c.bf16 %v1376_v41, %v1376_v41 }
 0x6a4   : > { %v1560_v45 = vsel %vm1512_vm2, %v1379_v42, 0  ;;  %v3309_v42 = vld [vmem:[%s4539_s30 + $0x40] sm:$0xff]  }
 0x6a5   : > { %2894 = vmatpush3.bf16.msra.mxu1 %v1560_v45  ;;  %v3310_v45 = vld [vmem:[%s4539_s30] sm:$0xff]   ;;  %2799 = vmatprep.subr.bf16.mxu0 %v3309_v42  ;;  %v2764_v42 = vld [vmem:[%s5060_s22] ss:$0 sm:$0xff] }
 0x6a6   : > { %1857 = vmatprep.subr.bf16.mxu1 %v3287_v11 }
 0x6a8   : > { %v3332_v47 = vpop.eup %3331 }
 0x6a9   : > { %v1506_v48 = vmul.f32 %v3332_v47, %v3328_v33  ;;  %v3311_v47 = vld [vmem:[%s4539_s30 + $0x48] sm:$0xff]  }
 0x6ab   : > { %v1508_v49 = vpack.c.bf16 %v1506_v48, %v1506_v48  ;;  %v3312_v48 = vld [vmem:[%s4539_s30 + $0x8] sm:$0xff]  }
 0x6ad   : > { %2896 = vmatmul.mubr.msk.bf16.vlgmr.msra.gmra.mrb[16].mxu1 %vm1484_vm3, %v1508_v49  ;;  %v3313_v49 = vld [vmem:[%s4539_s30 + $0x50] sm:$0xff]  }
 0x6ae   : > { %1889 = vmatprep.mubr.bf16.mxu1 %v3915_v16  ;;  %1858 = vmatpush1.bf16.msra.mxu1 %v3285_v10 }
 0x6af   : > { %1859 = vmatprep.subr.bf16.mxu1 %v3290_v12 }
 0x6b2   : > { %1860 = vmatpush1.bf16.msra.mxu1 %v3288_v13 }
 0x6b3   : > { %1861 = vmatprep.subr.bf16.mxu1 %v3293_v14 }
 0x6b6   : > { %1862 = vmatpush1.bf16.msra.mxu1 %v3291_v15 }
 0x6b7   : > { %1863 = vmatprep.subr.bf16.mxu1 %v3296_v21 }
 0x6ba   : > { %1864 = vmatpush1.bf16.msra.mxu1 %v3294_v22 }
 0x6bb   : > { %1865 = vmatprep.subr.bf16.mxu1 %v3299_v23  ;;  %v2746_v23 = vld [vmem:[%s5058_s19] ss:$0 sm:$0xff] }
 0x6be   : > { %1866 = vmatpush1.bf16.msra.mxu1 %v3297_v24 }
 0x6bf   : > { %1867 = vmatprep.subr.bf16.mxu1 %v3302_v25 }
 0x6c2   : > { %1868 = vmatpush1.bf16.msra.mxu1 %v3300_v26 }
 0x6c3   : > { %1869 = vmatprep.subr.bf16.mxu1 %v3305_v27 }
 0x6c6   : > { %1870 = vmatpush1.bf16.msra.mxu1 %v3303_v28 }
 0x6c7   : > { %1871 = vmatprep.subr.bf16.mxu1 %v3308_v29 }
 0x6ca   : > { %1872 = vmatpush1.bf16.msra.mxu1 %v3306_v30 }
 0x70d   : > { %v1550_v53 = vpop.f32.mrb[12].mxu1 }
 0x70e   : > { %v2891_v55 = vpop.f32.mrb[13].mxu1 }
 0x70f   : > { %v1553_v16 = vpop.f32.mrb[14].mxu1  ;;  %v3319_v55 = vld [vmem:[%s4539_s30 + $0x68] sm:$0xff]  }
 0x710   : > { %v2892_v56 = vpop.f32.mrb[15].mxu1  ;;  %v3320_v16 = vld [vmem:[%s4539_s30 + $0x28] sm:$0xff]  }
 0x711   : > { %v3321_v56 = vld [vmem:[%s4539_s30 + $0x70] sm:$0xff]  }
 0x780   : > { %v1596_v61 = vpop.f32.mrb[16].mxu1 }
 0x781   : > { %1603 = vrot.lane.b32.xlu1 %v1596_v61, %s3918_s11  ;;  %v2897_v62 = vpop.f32.mrb[17].mxu1  ;;  %v1770_v61 = vrot.slane %v1765_v60, %v1140_v46 }
 0x782   : > { %v1599_v63 = vpop.f32.mrb[18].mxu1  ;;  %v1774_v62 = vrot.slane %v1765_v60, %v1144_v44  ;;  %v2217_v60 = vld [vmem:[%s5062_s5 + $0x18] sm:$0xff] (!%p2765_p4) }
 0x783   : > { %v2898_v0 = vpop.f32.mrb[19].mxu1 }
 0x7f3   : > { %v1604_v1 = vpop.permute.xlu1 %1603 }
 0x7f4   : > { %v1606_v2 = vsel %vm1381_vm1, %v1550_v53, %v1604_v1  ;;  %v3317_v53 = vld [vmem:[%s4539_s30 + $0x60] sm:$0xff]  }
 0x7f5   : > { %v1607_v3 = vpack.c.bf16 %v1606_v2, %v1606_v2 }
 0x7f7   : > { %2916 = vmatmul.mubr.bf16.vlgmr.msra.gmra.mrb[4].mxu0 %v1607_v3 }
 0x7f8   : > { %2800 = vmatpush3.bf16.msra.mxu0 %v3310_v45 }
 0x7f9   : > { %2801 = vmatprep.subr.bf16.mxu0 %v3311_v47 }
 0x7fc   : > { %2802 = vmatpush3.bf16.msra.mxu0 %v3312_v48  ;;  %v2127_v48 = vld [vmem:[#allocation17 + $0x8] sm:$0xff] (!%p2765_p4) }
 0x7fd   : > { %2803 = vmatprep.subr.bf16.mxu0 %v3313_v49  ;;  %v2128_v49 = vld [vmem:[#allocation17 + $0x10] sm:$0xff] (!%p2765_p4) }
 0x800   : > { %2804 = vmatpush3.bf16.msra.mxu0 %v3314_v50  ;;  %v3919_v50 = vmov (!%p2765_p4), 0.0|0.0  }
 0x801   : > { %2805 = vmatprep.subr.bf16.mxu0 %v3315_v51  ;;  %3013 = vmatprep.subr.bf16.mxu1 (!%p2765_p4), %v3919_v50 }
 0x804   : > { %2806 = vmatpush3.bf16.msra.mxu0 %v3316_v52  ;;  %v2129_v52 = vld [vmem:[#allocation17 + $0x18] sm:$0xff] (!%p2765_p4) }
 0x805   : > { %2807 = vmatprep.subr.bf16.mxu0 %v3317_v53  ;;  %v3921_v53 = vmov (!%p2765_p4), 0.0  }
 0x808   : > { %2808 = vmatpush3.bf16.msra.mxu0 %v3318_v54  ;;  %v2993_v54 = vpack.c.bf16 (!%p2765_p4), %v2129_v52, %v2128_v49 }
 0x809   : > { %2809 = vmatprep.subr.bf16.mxu0 %v3319_v55  ;;  %v2130_v55 = vld [vmem:[#allocation17 + $0x20] sm:$0xff] (!%p2765_p4) }
 0x80c   : > { %2810 = vmatpush3.bf16.msra.mxu0 %v3320_v16  ;;  %v2131_v16 = vld [vmem:[#allocation17 + $0x28] sm:$0xff] (!%p2765_p4) }
 0x80d   : > { %2811 = vmatprep.subr.bf16.mxu0 %v3321_v56  ;;  %v2214_v56 = vld [vmem:[%s5062_s5] sm:$0xff] (!%p2765_p4) }
 0x810   : > { %2812 = vmatpush3.bf16.msra.mxu0 %v3322_v57  ;;  %v2215_v57 = vld [vmem:[%s5062_s5 + $0x8] sm:$0xff] (!%p2765_p4) }
 0x811   : > { %2813 = vmatprep.subr.bf16.mxu0 %v3323_v58  ;;  %v3014_v58 = vpack.c.bf16 (!%p2765_p4), %v2215_v57, %v2214_v56 }
 0x814   : > { %2814 = vmatpush3.bf16.msra.mxu0 %v3324_v59  ;;  %v2216_v59 = vld [vmem:[%s5062_s5 + $0x10] sm:$0xff] (!%p2765_p4) }
 0x815   : > { %2989 = vmatprep.subr.bf16.mxu0 (!%p2765_p4), %v3919_v50 }
 0x8ca   : > { %v1713_v4 = vpop.f32.mrb[4].mxu0 }
 0x8cb   : > { %v1714_v5 = vadd.f32 %v2719_v17, %v1713_v4  ;;  %v2917_v6 = vpop.f32.mrb[5].mxu0 }
 0x8cc   : > { %v1716_v7 = vpop.f32.mrb[6].mxu0 }
 0x8cd   : > { %v2918_v8 = vpop.f32.mrb[7].mxu0  ;;  %v1719_v9 = vadd.f32 %v1714_v5, %v4613_v37 }
 0x8cf   : > { %1722 = vadd.xlane.f32.xlu1 %v1719_v9 }
 0x95c   : > { %v1723_v37 = vpop.xlane.xlu1 %1722 }
 0x95d   : > { %v1725_v18 = vmul.f32 0.0078125, %v1723_v37 }
 0x95f   : > { %v1726_v19 = vsub.f32 %v1719_v9, %v1725_v18 }
 0x961   : > { %v1727_v20 = vmul.f32 %v1726_v19, %v1726_v19 }
 0x963   : > { %1728 = vadd.xlane.f32.xlu0 %v1727_v20 }
 0x9f0   : > { %v1729_v31 = vpop.xlane.xlu0 %1728 }
 0x9f1   : > { %v1730_v32 = vmul.f32 0.0078125, %v1729_v31 }
 0x9f3   : > { %v1731_v33 = vadd.f32 1e-12, %v1730_v32 }
 0x9f5   : > { %3333 = vrsqrt.f32 %v1731_v33 }
 0x9ff   : > { %v3334_v34 = vpop.eup %3333 }
 0xa00   : > { %v1733_v36 = vmul.f32 %v3334_v34, %v1726_v19 }
 0xa02   : > { %v1740_v39 = vmul.f32 %v2728_v35, %v1733_v36 }
 0xa04   : > { %v4712_v40 = vadd.f32 %v2729_v38, %v1740_v39  ;;  %v2763_v39 = vld [vmem:[%s5059_s2] ss:$0 sm:$0xff] }
 0xa06   : > { %v1748_v41 = vpack.c.bf16 %v4712_v40, %v4712_v40 }
 0xa08   : > { %1890 = vmatmul.mubr.bf16.vlgmr.msra.gmra.mrb[20].mxu1 %v1748_v41 }
 0xa09   : > { %2986 = vmatprep.mubr.msk.f32.mxu1 (!%p2765_p4), %vm3920_vm4, %v3921_v53  ;;  %3015 = vmatpush3.bf16.msra.mxu1 (!%p2765_p4), %v3014_v58 }
 0xa0a   : > { %3016 = vmatprep.subr.bf16.mxu1 (!%p2765_p4), %v3919_v50 }
 0xadb   : > { %v1891_v63 = vpop.f32.mrb[20].mxu1 }
 0xadc   : > { %v1892_v0 = vadd.f32 %v1891_v63, %v1770_v61  ;;  %v1893_v1 = vpop.f32.mrb[21].mxu1  ;;  %v2996_v61 = vpack.c.bf16 (!%p2765_p4), %v2131_v16, %v2130_v55  ;;  %v2133_v63 = vld [vmem:[#allocation17 + $0x38] sm:$0xff] (!%p2765_p4) }
 0xadd   : > { %v1894_v2 = vadd.f32 %v1893_v1, %v1774_v62  ;;  %v1895_v3 = vpop.f32.mrb[22].mxu1  ;;  %v2132_v62 = vld [vmem:[#allocation17 + $0x30] sm:$0xff] (!%p2765_p4)  ;;  %v2218_v1 = vld [vmem:[%s5062_s5 + $0x20] sm:$0xff] (!%p2765_p4) }
 0xade   : > { %v1900_v17 = vmul.f32 0.044715, %v1892_v0  ;;  %v1896_v4 = vpop.f32.mrb[23].mxu1  ;;  %v1898_v46 = vmul.f32 0.5, %v1892_v0  ;;  %v2999_v3 = vpack.c.bf16 (!%p2765_p4), %v2133_v63, %v2132_v62 }
 0xadf   : > { %v1901_v5 = vmul.f32 0.044715, %v1894_v2  ;;  %v1899_v15 = vmul.f32 0.5, %v1894_v2  ;;  %v2135_v4 = vld [vmem:[#allocation17 + $0x48] sm:$0xff] (!%p2765_p4) }
 0xae0   : > { %v1902_v6 = vmul.f32 %v1900_v17, %v1892_v0  ;;  %v2134_v17 = vld [vmem:[#allocation17 + $0x40] sm:$0xff] (!%p2765_p4) }
 0xae1   : > { %v1903_v7 = vmul.f32 %v1901_v5, %v1894_v2 }
 0xae2   : > { %v1904_v8 = vmul.f32 %v1902_v6, %v1892_v0  ;;  %v2220_v6 = vld [vmem:[%s5062_s5 + $0x30] sm:$0xff] (!%p2765_p4) }
 0xae3   : > { %v1905_v9 = vmul.f32 %v1903_v7, %v1894_v2  ;;  %v2221_v7 = vld [vmem:[%s5062_s5 + $0x38] sm:$0xff] (!%p2765_p4) }
 0xae4   : > { %v1906_v10 = vadd.f32 %v1904_v8, %v1892_v0  ;;  %v3017_v0 = vpack.c.bf16 (!%p2765_p4), %v2217_v60, %v2216_v59  ;;  %v3002_v8 = vpack.c.bf16 (!%p2765_p4), %v2135_v4, %v2134_v17 }
 0xae5   : > { %v1907_v11 = vadd.f32 %v1905_v9, %v1894_v2  ;;  %v2219_v2 = vld [vmem:[%s5062_s5 + $0x28] sm:$0xff] (!%p2765_p4) }
 0xae6   : > { %v1908_v12 = vmul.f32 0.7978846, %v1906_v10  ;;  %3018 = vmatpush3.bf16.msra.mxu1 (!%p2765_p4), %v3017_v0  ;;  %v3020_v5 = vpack.c.bf16 (!%p2765_p4), %v2219_v2, %v2218_v1  ;;  %v2136_v9 = vld [vmem:[#allocation17 + $0x50] sm:$0xff] (!%p2765_p4)  ;;  %v2137_v10 = vld [vmem:[#allocation17 + $0x58] sm:$0xff] (!%p2765_p4) }
 0xae7   : > { %v1909_v13 = vmul.f32 0.7978846, %v1907_v11  ;;  %3019 = vmatprep.subr.bf16.mxu1 (!%p2765_p4), %v3919_v50  ;;  %v3023_v11 = vpack.c.bf16 (!%p2765_p4), %v2221_v7, %v2220_v6 }
 0xae8   : > { %3335 = vtanh.f32 %v1908_v12  ;;  %v2222_v12 = vld [vmem:[%s5062_s5 + $0x40] sm:$0xff] (!%p2765_p4) }
 0xae9   : > { %3337 = vtanh.f32 %v1909_v13  ;;  %v2223_v13 = vld [vmem:[%s5062_s5 + $0x48] sm:$0xff] (!%p2765_p4) }
 0xaea   : > { %3021 = vmatpush3.bf16.msra.mxu1 (!%p2765_p4), %v3020_v5 }
 0xaeb   : > { %3022 = vmatprep.subr.bf16.mxu1 (!%p2765_p4), %v3919_v50 }
 0xaee   : > { %3024 = vmatpush3.bf16.msra.mxu1 (!%p2765_p4), %v3023_v11 }
 0xaef   : > { %3025 = vmatprep.subr.bf16.mxu1 (!%p2765_p4), %v3919_v50 }
 0xaf2   : > { %v3336_v43 = vpop.eup %3335 }
 0xaf3   : > { %v3338_v44 = vpop.eup %3337  ;;  %v1912_v14 = vadd.f32 1.0, %v3336_v43  ;;  %v3005_v43 = vpack.c.bf16 (!%p2765_p4), %v2137_v10, %v2136_v9 }
 0xaf4   : > { %v1913_v37 = vadd.f32 1.0, %v3338_v44  ;;  %v2138_v44 = vld [vmem:[#allocation17 + $0x60] sm:$0xff] (!%p2765_p4) }
 0xaf5   : > { %v1914_v18 = vmul.f32 %v1912_v14, %v1898_v46  ;;  %v2139_v46 = vld [vmem:[#allocation17 + $0x68] sm:$0xff] (!%p2765_p4)  ;;  %v3026_v14 = vpack.c.bf16 (!%p2765_p4), %v2223_v13, %v2222_v12 }
 0xaf6   : > { %v1915_v19 = vmul.f32 %v1913_v37, %v1899_v15  ;;  %v3008_v15 = vpack.c.bf16 (!%p2765_p4), %v2139_v46, %v2138_v44  ;;  %v2140_v37 = vld [vmem:[#allocation17 + $0x70] sm:$0xff] (!%p2765_p4) }
 0xaf7   : > { %v1916_v21 = vpack.c.bf16 %v1914_v18, %v1914_v18  ;;  %v2141_v18 = vld [vmem:[#allocation17 + $0x78] sm:$0xff] (!%p2765_p4)  ;;  %3027 = vmatpush3.bf16.msra.mxu1 (!%p2765_p4), %v3026_v14 }
 0xaf8   : > { %v1917_v20 = vpack.c.bf16 %v1915_v19, %v1915_v19  ;;  %3028 = vmatprep.subr.bf16.mxu1 (!%p2765_p4), %v3919_v50  ;;  %v3011_v19 = vpack.c.bf16 (!%p2765_p4), %v2141_v18, %v2140_v37 }
 0xafa   : > { %2085 = vmatprep.mubr.bf16.mxu0 %v1917_v20  ;;  %v2224_v20 = vld [vmem:[%s5062_s5 + $0x50] sm:$0xff] (!%p2765_p4) }
 0xafb   : > { %2086 = vmatmul.mubr.bf16.vlgmr.msra.gmra.mrb[8].mxu0 %v1916_v21  ;;  %v2225_v21 = vld [vmem:[%s5062_s5 + $0x58] sm:$0xff] (!%p2765_p4) }
 0xafc   : > { %2951 = vmatprep.mubr.msk.f32.mxu0 (!%p2765_p4), %vm3920_vm4, %v3921_v53 }
 0xbce   : > { %v2815_v22 = vpop.f32.mrb[8].mxu0 }
 0xbcf   : > { %v2816_v24 = vpop.f32.mrb[9].mxu0 }
 0xbd0   : > { %v2817_v25 = vadd.f32 %v2816_v24, %v2815_v22  ;;  %v2818_v26 = vpop.f32.mrb[10].mxu0  ;;  %v3029_v22 = vpack.c.bf16 (!%p2765_p4), %v2225_v21, %v2224_v20  ;;  %v2227_v24 = vld [vmem:[%s5062_s5 + $0x68] sm:$0xff] (!%p2765_p4) }
 0xbd1   : > { %v2819_v27 = vpop.f32.mrb[11].mxu0  ;;  %v2228_v26 = vld [vmem:[%s5062_s5 + $0x70] sm:$0xff] (!%p2765_p4) }
 0xbd2   : > { %v2088_v28 = vadd.f32 %v2817_v25, %v2746_v23  ;;  %3030 = vmatpush3.bf16.msra.mxu1 (!%p2765_p4), %v3029_v22  ;;  %v2226_v23 = vld [vmem:[%s5062_s5 + $0x60] sm:$0xff] (!%p2765_p4)  ;;  %v2229_v27 = vld [vmem:[%s5062_s5 + $0x78] sm:$0xff] (!%p2765_p4) }
 0xbd3   : > { %3031 = vmatprep.subr.bf16.mxu1 (!%p2765_p4), %v3919_v50  ;;  %v3032_v25 = vpack.c.bf16 (!%p2765_p4), %v2227_v24, %v2226_v23 }
 0xbd4   : > { %v2093_v29 = vadd.f32 %v2088_v28, %v4712_v40  ;;  %v2126_v40 = vld [vmem:[#allocation17] sm:$0xff] (!%p2765_p4)  ;;  %v3035_v28 = vpack.c.bf16 (!%p2765_p4), %v2229_v27, %v2228_v26 }
 0xbd5   : > { %v2990_v51 = vpack.c.bf16 (!%p2765_p4), %v2127_v48, %v2126_v40 }
 0xbd6   : > { %2096 = vadd.xlane.f32.xlu0 %v2093_v29  ;;  %3033 = vmatpush3.bf16.msra.mxu1 (!%p2765_p4), %v3032_v25 }
 0xbd7   : > { %2991 = vmatpush3.bf16.msra.mxu0 (!%p2765_p4), %v2990_v51  ;;  %3034 = vmatprep.subr.bf16.mxu1 (!%p2765_p4), %v3919_v50 }
 0xbd8   : > { %2992 = vmatprep.subr.bf16.mxu0 (!%p2765_p4), %v3919_v50 }
 0xbda   : > { %3036 = vmatpush3.bf16.msra.mxu1 (!%p2765_p4), %v3035_v28 }
 0xbdb   : > { %2994 = vmatpush3.bf16.msra.mxu0 (!%p2765_p4), %v2993_v54 }
 0xbdc   : > { %2995 = vmatprep.subr.bf16.mxu0 (!%p2765_p4), %v3919_v50 }
 0xbdf   : > { %2997 = vmatpush3.bf16.msra.mxu0 (!%p2765_p4), %v2996_v61 }
 0xbe0   : > { %2998 = vmatprep.subr.bf16.mxu0 (!%p2765_p4), %v3919_v50 }
 0xbe3   : > { %3000 = vmatpush3.bf16.msra.mxu0 (!%p2765_p4), %v2999_v3 }
 0xbe4   : > { %3001 = vmatprep.subr.bf16.mxu0 (!%p2765_p4), %v3919_v50 }
 0xbe7   : > { %3003 = vmatpush3.bf16.msra.mxu0 (!%p2765_p4), %v3002_v8 }
 0xbe8   : > { %3004 = vmatprep.subr.bf16.mxu0 (!%p2765_p4), %v3919_v50 }
 0xbeb   : > { %3006 = vmatpush3.bf16.msra.mxu0 (!%p2765_p4), %v3005_v43 }
 0xbec   : > { %3007 = vmatprep.subr.bf16.mxu0 (!%p2765_p4), %v3919_v50 }
 0xbef   : > { %3009 = vmatpush3.bf16.msra.mxu0 (!%p2765_p4), %v3008_v15 }
 0xbf0   : > { %3010 = vmatprep.subr.bf16.mxu0 (!%p2765_p4), %v3919_v50 }
 0xbf3   : > { %3012 = vmatpush3.bf16.msra.mxu0 (!%p2765_p4), %v3011_v19 }
 0xc63   : > { %v2097_v30 = vpop.xlane.xlu0 %2096 }
 0xc64   : > { %v2098_v31 = vmul.f32 0.0078125, %v2097_v30 }
 0xc66   : > { %v2099_v32 = vsub.f32 %v2093_v29, %v2098_v31  ;;  %v2142_v29 = vld [vmem:[#allocation18] sm:$0x1] (!%p2765_p4) }
 0xc68   : > { %v2100_v33 = vmul.f32 %v2099_v32, %v2099_v32 }
 0xc6a   : > { %2101 = vadd.xlane.f32.xlu0 %v2100_v33 }
 0xcf7   : > { %v2102_v34 = vpop.xlane.xlu0 %2101 }
 0xcf8   : > { %v2103_v35 = vmul.f32 0.0078125, %v2102_v34  ;;  %v2230_v34 = vld [vmem:[#allocation20] sm:$0x1] (!%p2765_p4) }
 0xcfa   : > { %v2104_v36 = vadd.f32 1e-12, %v2103_v35 }
 0xcfc   : > { %3339 = vrsqrt.f32 %v2104_v36 }
 0xd06   : > { %v3340_v38 = vpop.eup %3339 }
 0xd07   : > { %v2106_v41 = vmul.f32 %v3340_v38, %v2099_v32  ;;  %2125 = sbr.rel (%p2765_p4) target bundleno = 4095 (0xfff), region = 164 }
 0xd09   : > { %v2113_v45 = vmul.f32 %v2763_v39, %v2106_v41 }
 0xd0b   : > { %v4744_v47 = vadd.f32 %v2764_v42, %v2113_v45 }
 0xd0d   : > { %2121 = vst [vmem:[#allocation2] sm:$0xff] %v4744_v47  ;;  %2952 = vmatmul.mubr.f32.vlgmr.msra.gmra.mrb[0].mxu0 (!%p2765_p4), %v4744_v47 }
 0xde0   : > { %v2209_v30 = vpop.f32.mrb[0].mxu0 }
 0xde1   : > { %v2210_v31 = vadd.f32 %v2209_v30, %v2142_v29  ;;  %v2953_v32 = vpop.f32.mrb[1].mxu0 }
 0xde3   : > { %3341 = vtanh.f32 %v2210_v31 }
 0xded   : > { %v3342_v33 = vpop.eup %3341 }
 0xdee   : > { %2987 = vmatmul.mubr.f32.vlgmr.msra.gmra.mrb[0].mxu1 %v3342_v33 }
 0xec1   : > { %v2297_v35 = vpop.f32.mrb[0].mxu1 }
 0xec2   : > { %v2298_v36 = vadd.f32 %v2297_v35, %v2230_v34  ;;  %v2988_v38 = vpop.f32.mrb[1].mxu1 }
 0xec4   : > { %v2302_v39 = vsel %vm2301_vm5, %v2298_v36, -inf }
 0xec5   : > { %2303 = vmax.xlane.f32.xlu0 %v2302_v39 }
 0xf52   : > { %v2304_v41 = vpop.xlane.xlu0 %2303 }
 0xf53   : > { %v2305_v42 = vsub.f32 %v2298_v36, %v2304_v41 }
 0xf55   : > { %v2306_v45 = vmul.f32 1.442695, %v2305_v42 }
 0xf57   : > { %3343 = vpow2.f32 %v2306_v45 }
 0xf61   : > { %v3344_v47 = vpop.eup %3343 }
 0xf62   : > { %v2308_v40 = vsel %vm2301_vm5, %v3344_v47, 0.0 }
 0xf63   : > { %2309 = vadd.xlane.f32.xlu0 %v2308_v40 }
 0xff0   : > { %v2310_v48 = vpop.xlane.xlu0 %2309 }
 0xff1   : > { %3345 = vrcp.f32 %v2310_v48 }
 0xffb   : > { %v3346_v49 = vpop.eup %3345 }
 0xffc   : > { %v2312_v50 = vmul.f32 %v3346_v49, %v3344_v47 }
 0xffe   : > { %2313 = vst.msk [vmem:[%s4584_s21] sm:$0x1] %vm2301_vm5, %v2312_v50 }
 0xfff PF: > { %s5063_s24 = sld [smem:[#allocation33_spill]]  ;;  %s5064_s6 = sld [smem:[#allocation29_spill]] }
0x1000   : > { %s5065_s25 = sld [smem:[#allocation39_spill]]  ;;  %s5066_s14 = sld [smem:[#allocation65_spill]] }
0x1001   : > { %s2327_s3 = sshll.u32 %s4584_s21, 4  ;;  %s3922_s17 = smov [#allocation21]   ;;  %s2328_s3 = int_to_ptr.vmem [resolvable:$true] %s2327_s3 }
0x1002   : > { %s3757_s11 = scalar_lea.vmem %s2328_s3, 16  ;;  %s3761_s27 = sshll.u32 %s3922_s17, 4  ;;  %s3762_s27 = int_to_ptr.vmem [resolvable:$false] %s3761_s27 }
0x1003   : > { %p3758_p9 = scmp.ne.s32.totalorder %s2328_s3, %s3757_s11  ;;  %s3763_s0 = scalar_lea.vmem %s3762_s27, 32 }
0x1004   : > { %p3764_p7 = scmp.lt.s32.totalorder %s2328_s3, %s3762_s27  ;;  %p3765_p11 = scmp.lt.s32.totalorder %s3763_s0, %s3757_s11 }
0x1005   : > { %s2766_s15 = sshll.u32 %s5063_s24, 4  ;;  %s5067_s28 = sand.u32 1, %s5064_s6  }
0x1006   : > { %s4821_s29 = scalar_lea.hbm %s5066_s14, %s2766_s15  ;;  %s2315_s7 = scalar_lea.sflag [#allocation5], %s5067_s28 }
0x1007   : > { %p5068_p5 = scmp.ne.s32.totalorder %s5065_s25, 0  ;;  %p3766_p8 = por %p3765_p11, %p3764_p7 }
0x1009   : > { %p3759_p10 = pnand %p3758_p9, %p5068_p5 }
0x100b   : > { %p3760_p3 = pneg %p3759_p10 }
0x100d   : > { %p3767_p0 = pnand %p3766_p8, %p3760_p3 }
0x100f   : > { %3770 = shalt.err (!%p3767_p0)
}
0x1010   : > { %s3771_s21 = scalar_lea.hbm %s4821_s29, 16  ;;  %s3775_s12 = scalar_lea.hbm %s5066_s14, 32 }
0x1011   : > { %p3772_p13 = scmp.ne.s32.totalorder %s4821_s29, %s3771_s21  ;;  %p3776_p6 = scmp.lt.u32.totalorder %s4821_s29, %s5066_s14 }
0x1012   : > { %p3777_p2 = scmp.lt.u32.totalorder %s3775_s12, %s3771_s21  ;;  %p3779_p9 = scmp.lt.u32.totalorder %s3771_s21, %s4821_s29 }
0x1013   : > { %p3773_p1 = pnand %p3772_p13, %p5068_p5 }
0x1014   : > { %p3778_p4 = por %p3777_p2, %p3776_p6 }
0x1015   : > { %p3774_p12 = pneg %p3773_p1 }
0x1016   : > { %p3780_p10 = por %p3779_p9, %p3778_p4 }
0x1018   : > { %p3781_p3 = pnand %p3780_p10, %p3774_p12 }
0x101a   : > { %3784 = shalt.err (!%p3781_p3)
}
0x101b   : > { %3077 = dma.vmem_to_hbm [thread:$0]  (%p5068_p5), %s2328_s3, 16, %s4821_s29, %s2315_s7  }
0x101c PF: > { %s5069_s22 = sld [smem:[#allocation36_spill]]  ;;  %s5070_s1 = sld [smem:[#allocation28_spill]] }
0x101d   : > { %s5071_s10 = sld [smem:[#allocation40_spill]] }
0x1022   : > { %p3138_p7 = scmp.ge.s32.totalorder %s5069_s22, 2  ;;  %s2339_s30 = sand.u32 1, %s5070_s1  }
0x1023   : > { %p5072_p11 = scmp.ne.s32.totalorder %s5071_s10, 0  ;;  %s2340_s18 = scalar_lea.sflag [#allocation5], %s2339_s30 }
0x1025   : > { %p3124_p8 = pnand %p3138_p7, %p5072_p11 }
0x1027   : > { %3850 = dma.done.wait (!%p3124_p8), %s2340_s18, 16  }
0x1028   : > { %3852 = vsyncadd (!%p3124_p8), %s2340_s18, 4294967280  ;;  %s36_s4 = sadd.s32 1, %s5069_s22   ;;  %s5073_s1 = sld [smem:[#allocation29_spill]] }
0x1029   : > { %p33_p0 = scmp.ge.s32.totalorder %s36_s4, 6   ;;  %s5074_s24 = sld [smem:[#allocation30_spill]] }
0x102a   : > { %s5075_s2 = sld [smem:[#allocation31_spill]]  ;;  %s5076_s25 = sld [smem:[#allocation44_spill]] }
0x102b   : > { %s5077_s3 = sld [smem:[#allocation34_spill]]  ;;  %s5078_s26 = sld [smem:[#allocation35_spill]] }
0x102c   : > { %s5079_s27 = sld [smem:[#allocation42_spill]]  ;;  %s5080_s28 = sld [smem:[#allocation43_spill]] }
0x102d   : > { %s5081_s22 = smov %s3863_s23  ;;  %s5082_s23 = smov %s4192_s16 }
0x102e   :  { %35 = sbr.rel (!%p33_p0) target bundleno = 32 (0x20), region = 275 }
0x1035   :  { %2344 = vsyncpa [#allocation4], 1 }
0x1036   :  { %2346 = vsyncpa [#allocation4 + $0x1], 1 }
0x1037   :  { %2347 = vsyncpa [#allocation7], 1 }
0x1038   :  { %2348 = vsyncpa [#allocation19], 1 }
0x1039   :  { %2349 = vsyncpa [#allocation5], 1 }
0x103a   :  { %2351 = vsyncpa [#allocation5 + $0x1], 1 }

</bundles_post_ra>
